<compile_context>
chip_gen: v7x
topology: tpu7x:2x2x1
jax: 0.10.0
libtpu: 0.0.40
codegen_flags: <defaults>
</compile_context>

<pallas_src>
import functools

import jax
import jax.numpy as jnp
from jax.experimental import pallas as pl
from jax.experimental.pallas import tpu as pltpu


def _sigmoid(z):
    # Single EUP op (tanh) + cheap VPU mul/add: sigmoid(z) = 0.5*tanh(z/2) + 0.5
    return 0.5 * jnp.tanh(0.5 * z) + 0.5


def _mlp_kernel(x_ref, w_in_ref, b_in_ref, w_h_ref, b_h_ref, w_out_t_ref,
                b_out_ref, o_ref, *, num_hidden_layers):
    """Whole forward pass for one batch tile, entirely in VMEM.

    Layout: batch on the lane (last) axis.
      x_ref:       (1, TB)
      w_in_ref:    (NN, 1)        b_in_ref:  (NN, 1)
      w_h_ref:     (NL, NN, NN)   b_h_ref:   (NL, NN, 1)   (torch (out, in) layout)
      w_out_t_ref: (NN, 1)        b_out_ref: (1, 1)
      o_ref:       (1, TB)
    """
    x = x_ref[...]                                            # (1, TB)

    # Input layer (K=1): outer product on the VPU, no MXU pass needed.
    h = _sigmoid(w_in_ref[...] * x + b_in_ref[...])           # (NN, TB)

    # Hidden layers (torch (out, in) layout): y = W @ h on the MXU, f32 acc.
    for i in range(num_hidden_layers):
        z = jnp.dot(w_h_ref[i], h, preferred_element_type=jnp.float32)
        h = _sigmoid(z + b_h_ref[i])                          # (NN, TB)

    # Output layer (1 output feature): VPU broadcast-multiply + cross-sublane
    # reduce over NN instead of a 1-row MXU matmul (XLU slot is idle here).
    out = jnp.sum(w_out_t_ref[...] * h, axis=0, keepdims=True)  # (1, TB)
    o_ref[...] = (out + b_out_ref[...]).astype(o_ref.dtype)


_MAX_TILE_B = 8192  # lane-dense activation tile cap (NN*TB*4 B ~ 1 MiB @ NN=32)


def _choose_tile_b(B):
    """Single big tile for small/medium batches (1-TC chips pay per-step
    overhead for nothing); for very large batches, an even number of big
    lane-dense tiles so v7x's two TensorCores both get work."""
    if B <= _MAX_TILE_B:
        return B
    for k in range(2, B + 1, 2):                 # even grid first (v7x megacore)
        if B % k == 0:
            tb = B // k
            if tb <= _MAX_TILE_B and tb % 128 == 0:
                return tb
    for k in range(2, B + 1):                    # any divisor fallback
        if B % k == 0 and B // k <= _MAX_TILE_B:
            return B // k
    return B


def _vmem_limit_bytes(tile_b, NN, NL, weight_buffers):
    """Shape-derived VMEM budget: weights (x buffering), double-buffered I/O
    tiles, live activations, plus headroom; clamped to the chip's physical
    VMEM (64 MiB/TC on v7x, 128 MiB on v5e/v6e)."""
    f32 = 4
    weights = f32 * (NN + NN + NL * NN * NN + NL * NN + NN + 1)
    io_tiles = 2 * 2 * f32 * tile_b              # x + out tiles, double-buffered
    live_act = 4 * f32 * NN * tile_b             # h / z temporaries (generous)
    need = weight_buffers * weights + io_tiles + live_act
    need = int(need * 1.5) + (2 << 20)           # Mosaic scratch headroom
    try:
        cap = int(pltpu.get_tpu_info().vmem_capacity_bytes)
    except Exception:
        cap = 64 << 20                           # conservative: v7x per-TC VMEM
    return int(min(max(need, 16 << 20), int(cap * 0.9)))


def _run_pallas(x_lane, w_in, b_in, w_h, b_h, w_out_t, b_out, *, tile_b,
                single_buffer_weights):
    B = x_lane.shape[1]
    NL, NN = w_h.shape[0], w_h.shape[1]
    grid = (B // tile_b,)

    def param_spec(shape):
        ndim = len(shape)
        idx = lambda i, _n=ndim: (0,) * _n
        if single_buffer_weights:
            # Grid-invariant index_map: one resident VMEM copy is enough.
            return pl.BlockSpec(shape, idx, pipeline_mode=pl.Buffered(1))
        return pl.BlockSpec(shape, idx)

    # Advisory cost hint for XLA's scheduler.
    flops = 2 * B * NN * (NL * NN + 2)
    transcendentals = B * NN * (NL + 1)
    param_bytes = 4 * (2 * NN + NL * NN * NN + NL * NN + NN + 1)
    cost = pl.CostEstimate(flops=flops, transcendentals=transcendentals,
                           bytes_accessed=param_bytes + 4 * 2 * B)

    return pl.pallas_call(
        functools.partial(_mlp_kernel, num_hidden_layers=NL),
        out_shape=jax.ShapeDtypeStruct((1, B), x_lane.dtype),
        grid_spec=pltpu.PrefetchScalarGridSpec(
            num_scalar_prefetch=0,
            grid=grid,
            in_specs=[
                # x: batch tiled on the lane axis (lane-dense loads/stores)
                pl.BlockSpec((1, tile_b), lambda i: (0, i)),
                param_spec((NN, 1)),
                param_spec((NN, 1)),
                param_spec((NL, NN, NN)),
                param_spec((NL, NN, 1)),
                param_spec((NN, 1)),
                param_spec((1, 1)),
            ],
            out_specs=pl.BlockSpec((1, tile_b), lambda i: (0, i)),
        ),
        compiler_params=pltpu.CompilerParams(
            dimension_semantics=("parallel",),
            vmem_limit_bytes=_vmem_limit_bytes(
                tile_b, NN, NL, 1 if single_buffer_weights else 2),
        ),
        cost_estimate=cost,
    )(x_lane, w_in, b_in, w_h, b_h, w_out_t, b_out)


def mlp_forward(x, params, *, tile_b=None):
    """Runs Net.forward with a Pallas kernel.

    Preferred (zero-relayout) contract: x of shape (1, B) or (B,) with the
    batch on the lane axis; the result has the same layout.  A torch-style
    (B, 1) column is also accepted (incurs one relayout each way).
    """
    w_in, b_in, w_h, b_h, w_out, b_out = params

    if x.ndim == 2 and x.shape[0] == 1:
        x_lane, out_shape = x, x.shape                     # already lane-major
    elif x.ndim == 1:
        x_lane, out_shape = x.reshape(1, -1), x.shape      # trivial
    elif x.ndim == 2 and x.shape[1] == 1:
        x_lane, out_shape = x.reshape(1, -1), x.shape      # torch layout: relayout
    else:
        raise ValueError(f"expected (B, 1), (1, B) or (B,) input, got {x.shape}")

    B = x_lane.shape[1]
    if tile_b is None:
        tile_b = _choose_tile_b(B)
    assert B % tile_b == 0, "batch must be a multiple of the batch tile"

    # Torch (1, NN) row -> (NN, 1) column used by the in-kernel VPU reduce
    # (tiny one-time relayout of NN floats).
    w_out_t = w_out.reshape(w_out.shape[1], 1)

    try:
        out = jax.block_until_ready(
            _run_pallas(x_lane, w_in, b_in, w_h, b_h, w_out_t, b_out,
                        tile_b=tile_b, single_buffer_weights=True))
    except Exception:
        # TODO(synk): pl.Buffered(1) unsupported on this jax/libtpu; fall back
        # to the default double-buffered parameter specs.
        out = _run_pallas(x_lane, w_in, b_in, w_h, b_h, w_out_t, b_out,
                          tile_b=tile_b, single_buffer_weights=False)

    return out.reshape(out_shape)


def init_params(key, NL, NN):
    """Deterministic parameter init; shapes match torch nn.Linear (out, in)."""
    ks = jax.random.split(key, 2 * NL + 4)
    w_in = jax.random.normal(ks[0], (NN, 1), jnp.float32) * 0.5
    b_in = jax.random.normal(ks[1], (NN, 1), jnp.float32) * 0.1
    w_h = jnp.stack([
        jax.random.normal(ks[2 + 2 * i], (NN, NN), jnp.float32) * (1.0 / NN ** 0.5)
        for i in range(NL)
    ])
    b_h = jnp.stack([
        jax.random.normal(ks[3 + 2 * i], (NN, 1), jnp.float32) * 0.1
        for i in range(NL)
    ])
    w_out = jax.random.normal(ks[2 + 2 * NL], (1, NN), jnp.float32) * (1.0 / NN ** 0.5)
    b_out = jax.random.normal(ks[3 + 2 * NL], (1, 1), jnp.float32) * 0.1
    return w_in, b_in, w_h, b_h, w_out, b_out


def mlp_reference(x, params):
    """Pure-JAX reference of the torch forward pass (row-major (B, 1) layout)."""
    w_in, b_in, w_h, b_h, w_out, b_out = params
    h = jax.nn.sigmoid(x @ w_in.T + b_in.T)            # (B, NN)
    for i in range(w_h.shape[0]):
        h = jax.nn.sigmoid(h @ w_h[i].T + b_h[i].T)    # (B, NN)
    return h @ w_out.T + b_out.T                       # (B, 1)


if __name__ == "__main__":
    NL, NN = 3, 32          # hidden layer count / width
    B = 256                 # small batch -> single lane-dense grid step

    key = jax.random.PRNGKey(0)
    k_x, k_p = jax.random.split(key)
    params = init_params(k_p, NL, NN)

    # Primary lane-major path: (1, B), no wrapper relayout.
    x_lane = jax.random.normal(k_x, (1, B), jnp.float32)
    out_lane = jax.block_until_ready(mlp_forward(x_lane, params))
    assert out_lane.shape == (1, B)

    # Torch-style (B, 1) compatibility path.
    x_col = x_lane.reshape(B, 1)
    out_col = jax.block_until_ready(mlp_forward(x_col, params))
    assert out_col.shape == (B, 1)

    ref = mlp_reference(x_col, params)                 # pure-JAX reference
    assert jnp.allclose(out_lane.reshape(B, 1), ref, atol=1e-5, rtol=1e-5), \
        "lane-major kernel mismatch vs reference"
    assert jnp.allclose(out_col, ref, atol=1e-5, rtol=1e-5), \
        "column-layout kernel mismatch vs reference"

    print("KERNEL_OK")
</pallas_src>

<mosaic_0001>
module attributes {stable_mosaic.version = 11 : i64} {
  func.func @_mlp_kernel(%arg0: i32, %arg1: memref<1x256xf32, #tpu.memory_space<vmem>>, %arg2: memref<32x1xf32, #tpu.memory_space<vmem>>, %arg3: memref<32x1xf32, #tpu.memory_space<vmem>>, %arg4: memref<3x32x32xf32, #tpu.memory_space<vmem>>, %arg5: memref<3x32x1xf32, #tpu.memory_space<vmem>>, %arg6: memref<32x1xf32, #tpu.memory_space<vmem>>, %arg7: memref<1x1xf32, #tpu.memory_space<vmem>>, %arg8: memref<1x256xf32, #tpu.memory_space<vmem>>) attributes {dimension_semantics = [#tpu.dimension_semantics<parallel>], iteration_bounds = array<i64: 1>, scalar_prefetch = 0 : i64, scratch_operands = 0 : i64, tpu.core_type = #tpu.core_type<tc>, window_params = [{transform_indices = @transform_0, window_bounds = array<i64: 1, 256>}, {pipeline_mode = #tpu.pipeline_mode<synchronous>, transform_indices = @transform_1, window_bounds = array<i64: 32, 1>}, {pipeline_mode = #tpu.pipeline_mode<synchronous>, transform_indices = @transform_2, window_bounds = array<i64: 32, 1>}, {pipeline_mode = #tpu.pipeline_mode<synchronous>, transform_indices = @transform_3, window_bounds = array<i64: 3, 32, 32>}, {pipeline_mode = #tpu.pipeline_mode<synchronous>, transform_indices = @transform_4, window_bounds = array<i64: 3, 32, 1>}, {pipeline_mode = #tpu.pipeline_mode<synchronous>, transform_indices = @transform_5, window_bounds = array<i64: 32, 1>}, {pipeline_mode = #tpu.pipeline_mode<synchronous>, transform_indices = @transform_6, window_bounds = array<i64: 1, 1>}, {transform_indices = @transform_7, window_bounds = array<i64: 1, 256>}]} {
    %c0 = arith.constant 0 : index
    %c0_0 = arith.constant 0 : index
    %0 = vector.load %arg1[%c0, %c0_0] : memref<1x256xf32, #tpu.memory_space<vmem>>, vector<1x256xf32>
    %c0_1 = arith.constant 0 : index
    %c0_2 = arith.constant 0 : index
    %1 = vector.load %arg2[%c0_1, %c0_2] : memref<32x1xf32, #tpu.memory_space<vmem>>, vector<32x1xf32>
    %2 = vector.broadcast %1 : vector<32x1xf32> to vector<32x256xf32>
    %3 = vector.broadcast %0 : vector<1x256xf32> to vector<32x256xf32>
    %4 = arith.mulf %2, %3 : vector<32x256xf32>
    %c0_3 = arith.constant 0 : index
    %c0_4 = arith.constant 0 : index
    %5 = vector.load %arg3[%c0_3, %c0_4] : memref<32x1xf32, #tpu.memory_space<vmem>>, vector<32x1xf32>
    %6 = vector.broadcast %5 : vector<32x1xf32> to vector<32x256xf32>
    %7 = arith.addf %4, %6 : vector<32x256xf32>
    %cst = arith.constant 5.000000e-01 : f32
    %8 = vector.broadcast %cst : f32 to vector<32x256xf32>
    %9 = arith.mulf %8, %7 : vector<32x256xf32>
    %10 = math.tanh %9 : vector<32x256xf32>
    %cst_5 = arith.constant 5.000000e-01 : f32
    %11 = vector.broadcast %cst_5 : f32 to vector<32x256xf32>
    %12 = arith.mulf %11, %10 : vector<32x256xf32>
    %cst_6 = arith.constant 5.000000e-01 : f32
    %13 = vector.broadcast %cst_6 : f32 to vector<32x256xf32>
    %14 = arith.addf %12, %13 : vector<32x256xf32>
    %c0_7 = arith.constant 0 : index
    %c0_8 = arith.constant 0 : index
    %c0_9 = arith.constant 0 : index
    %15 = vector.load %arg4[%c0_7, %c0_8, %c0_9] : memref<3x32x32xf32, #tpu.memory_space<vmem>>, vector<1x32x32xf32>
    %16 = vector.shape_cast %15 : vector<1x32x32xf32> to vector<32x32xf32>
    %cst_10 = arith.constant dense<0.000000e+00> : vector<32x256xf32>
    %17 = tpu.matmul %16, %14, %cst_10 {dimension_numbers = #tpu.dot_dimension_numbers<[1], [0], [0], [1], [0, 0, 1, 1], [], []>} : vector<32x32xf32>, vector<32x256xf32>, vector<32x256xf32> -> vector<32x256xf32>
    %c0_11 = arith.constant 0 : index
    %c0_12 = arith.constant 0 : index
    %c0_13 = arith.constant 0 : index
    %18 = vector.load %arg5[%c0_11, %c0_12, %c0_13] : memref<3x32x1xf32, #tpu.memory_space<vmem>>, vector<1x32x1xf32>
    %19 = vector.shape_cast %18 : vector<1x32x1xf32> to vector<32x1xf32>
    %20 = vector.broadcast %19 : vector<32x1xf32> to vector<32x256xf32>
    %21 = arith.addf %17, %20 : vector<32x256xf32>
    %cst_14 = arith.constant 5.000000e-01 : f32
    %22 = vector.broadcast %cst_14 : f32 to vector<32x256xf32>
    %23 = arith.mulf %22, %21 : vector<32x256xf32>
    %24 = math.tanh %23 : vector<32x256xf32>
    %cst_15 = arith.constant 5.000000e-01 : f32
    %25 = vector.broadcast %cst_15 : f32 to vector<32x256xf32>
    %26 = arith.mulf %25, %24 : vector<32x256xf32>
    %cst_16 = arith.constant 5.000000e-01 : f32
    %27 = vector.broadcast %cst_16 : f32 to vector<32x256xf32>
    %28 = arith.addf %26, %27 : vector<32x256xf32>
    %c1 = arith.constant 1 : index
    %c0_17 = arith.constant 0 : index
    %c0_18 = arith.constant 0 : index
    %29 = vector.load %arg4[%c1, %c0_17, %c0_18] : memref<3x32x32xf32, #tpu.memory_space<vmem>>, vector<1x32x32xf32>
    %30 = vector.shape_cast %29 : vector<1x32x32xf32> to vector<32x32xf32>
    %cst_19 = arith.constant dense<0.000000e+00> : vector<32x256xf32>
    %31 = tpu.matmul %30, %28, %cst_19 {dimension_numbers = #tpu.dot_dimension_numbers<[1], [0], [0], [1], [0, 0, 1, 1], [], []>} : vector<32x32xf32>, vector<32x256xf32>, vector<32x256xf32> -> vector<32x256xf32>
    %c1_20 = arith.constant 1 : index
    %c0_21 = arith.constant 0 : index
    %c0_22 = arith.constant 0 : index
    %32 = vector.load %arg5[%c1_20, %c0_21, %c0_22] : memref<3x32x1xf32, #tpu.memory_space<vmem>>, vector<1x32x1xf32>
    %33 = vector.shape_cast %32 : vector<1x32x1xf32> to vector<32x1xf32>
    %34 = vector.broadcast %33 : vector<32x1xf32> to vector<32x256xf32>
    %35 = arith.addf %31, %34 : vector<32x256xf32>
    %cst_23 = arith.constant 5.000000e-01 : f32
    %36 = vector.broadcast %cst_23 : f32 to vector<32x256xf32>
    %37 = arith.mulf %36, %35 : vector<32x256xf32>
    %38 = math.tanh %37 : vector<32x256xf32>
    %cst_24 = arith.constant 5.000000e-01 : f32
    %39 = vector.broadcast %cst_24 : f32 to vector<32x256xf32>
    %40 = arith.mulf %39, %38 : vector<32x256xf32>
    %cst_25 = arith.constant 5.000000e-01 : f32
    %41 = vector.broadcast %cst_25 : f32 to vector<32x256xf32>
    %42 = arith.addf %40, %41 : vector<32x256xf32>
    %c2 = arith.constant 2 : index
    %c0_26 = arith.constant 0 : index
    %c0_27 = arith.constant 0 : index
    %43 = vector.load %arg4[%c2, %c0_26, %c0_27] : memref<3x32x32xf32, #tpu.memory_space<vmem>>, vector<1x32x32xf32>
    %44 = vector.shape_cast %43 : vector<1x32x32xf32> to vector<32x32xf32>
    %cst_28 = arith.constant dense<0.000000e+00> : vector<32x256xf32>
    %45 = tpu.matmul %44, %42, %cst_28 {dimension_numbers = #tpu.dot_dimension_numbers<[1], [0], [0], [1], [0, 0, 1, 1], [], []>} : vector<32x32xf32>, vector<32x256xf32>, vector<32x256xf32> -> vector<32x256xf32>
    %c2_29 = arith.constant 2 : index
    %c0_30 = arith.constant 0 : index
    %c0_31 = arith.constant 0 : index
    %46 = vector.load %arg5[%c2_29, %c0_30, %c0_31] : memref<3x32x1xf32, #tpu.memory_space<vmem>>, vector<1x32x1xf32>
    %47 = vector.shape_cast %46 : vector<1x32x1xf32> to vector<32x1xf32>
    %48 = vector.broadcast %47 : vector<32x1xf32> to vector<32x256xf32>
    %49 = arith.addf %45, %48 : vector<32x256xf32>
    %cst_32 = arith.constant 5.000000e-01 : f32
    %50 = vector.broadcast %cst_32 : f32 to vector<32x256xf32>
    %51 = arith.mulf %50, %49 : vector<32x256xf32>
    %52 = math.tanh %51 : vector<32x256xf32>
    %cst_33 = arith.constant 5.000000e-01 : f32
    %53 = vector.broadcast %cst_33 : f32 to vector<32x256xf32>
    %54 = arith.mulf %53, %52 : vector<32x256xf32>
    %cst_34 = arith.constant 5.000000e-01 : f32
    %55 = vector.broadcast %cst_34 : f32 to vector<32x256xf32>
    %56 = arith.addf %54, %55 : vector<32x256xf32>
    %c0_35 = arith.constant 0 : index
    %c0_36 = arith.constant 0 : index
    %57 = vector.load %arg6[%c0_35, %c0_36] : memref<32x1xf32, #tpu.memory_space<vmem>>, vector<32x1xf32>
    %58 = vector.broadcast %57 : vector<32x1xf32> to vector<32x256xf32>
    %59 = arith.mulf %58, %56 : vector<32x256xf32>
    %cst_37 = arith.constant dense<0.000000e+00> : vector<256xf32>
    %60 = vector.multi_reduction <add>, %59, %cst_37 [0] : vector<32x256xf32> to vector<256xf32>
    %61 = vector.shape_cast %60 : vector<256xf32> to vector<1x256xf32>
    %c0_38 = arith.constant 0 : index
    %c0_39 = arith.constant 0 : index
    %62 = vector.load %arg7[%c0_38, %c0_39] : memref<1x1xf32, #tpu.memory_space<vmem>>, vector<1x1xf32>
    %63 = vector.broadcast %62 : vector<1x1xf32> to vector<1x256xf32>
    %64 = arith.addf %61, %63 : vector<1x256xf32>
    %c0_40 = arith.constant 0 : index
    %c0_41 = arith.constant 0 : index
    %65 = vector.load %arg8[%c0_40, %c0_41] : memref<1x256xf32, #tpu.memory_space<vmem>>, vector<1x256xf32>
    tpu.vector_store %arg8[%c0_40, %c0_41], %64 {strides = array<i32>} : memref<1x256xf32, #tpu.memory_space<vmem>>, vector<1x256xf32>,
    return
  }
  func.func @transform_0(%arg0: i32) -> (i32, i32) {
    %c0_i32 = arith.constant 0 : i32
    %c0_i32_0 = arith.constant 0 : i32
    return %c0_i32, %arg0 : i32, i32
  }
  func.func @transform_1(%arg0: i32) -> (i32, i32) {
    %c0_i32 = arith.constant 0 : i32
    %c0_i32_0 = arith.constant 0 : i32
    %c0_i32_1 = arith.constant 0 : i32
    return %c0_i32, %c0_i32_0 : i32, i32
  }
  func.func @transform_2(%arg0: i32) -> (i32, i32) {
    %c0_i32 = arith.constant 0 : i32
    %c0_i32_0 = arith.constant 0 : i32
    %c0_i32_1 = arith.constant 0 : i32
    return %c0_i32, %c0_i32_0 : i32, i32
  }
  func.func @transform_3(%arg0: i32) -> (i32, i32, i32) {
    %c0_i32 = arith.constant 0 : i32
    %c0_i32_0 = arith.constant 0 : i32
    %c0_i32_1 = arith.constant 0 : i32
    %c0_i32_2 = arith.constant 0 : i32
    return %c0_i32, %c0_i32_0, %c0_i32_1 : i32, i32, i32
  }
  func.func @transform_4(%arg0: i32) -> (i32, i32, i32) {
    %c0_i32 = arith.constant 0 : i32
    %c0_i32_0 = arith.constant 0 : i32
    %c0_i32_1 = arith.constant 0 : i32
    %c0_i32_2 = arith.constant 0 : i32
    return %c0_i32, %c0_i32_0, %c0_i32_1 : i32, i32, i32
  }
  func.func @transform_5(%arg0: i32) -> (i32, i32) {
    %c0_i32 = arith.constant 0 : i32
    %c0_i32_0 = arith.constant 0 : i32
    %c0_i32_1 = arith.constant 0 : i32
    return %c0_i32, %c0_i32_0 : i32, i32
  }
  func.func @transform_6(%arg0: i32) -> (i32, i32) {
    %c0_i32 = arith.constant 0 : i32
    %c0_i32_0 = arith.constant 0 : i32
    %c0_i32_1 = arith.constant 0 : i32
    return %c0_i32, %c0_i32_0 : i32, i32
  }
  func.func @transform_7(%arg0: i32) -> (i32, i32) {
    %c0_i32 = arith.constant 0 : i32
    %c0_i32_0 = arith.constant 0 : i32
    return %c0_i32, %arg0 : i32, i32
  }
}

module attributes {stable_mosaic.version = 11 : i64} {
  func.func @_mlp_kernel(%arg0: i32, %arg1: memref<1x256xf32, #tpu.memory_space<vmem>>, %arg2: memref<32x1xf32, #tpu.memory_space<vmem>>, %arg3: memref<32x1xf32, #tpu.memory_space<vmem>>, %arg4: memref<3x32x32xf32, #tpu.memory_space<vmem>>, %arg5: memref<3x32x1xf32, #tpu.memory_space<vmem>>, %arg6: memref<32x1xf32, #tpu.memory_space<vmem>>, %arg7: memref<1x1xf32, #tpu.memory_space<vmem>>, %arg8: memref<1x256xf32, #tpu.memory_space<vmem>>) attributes {dimension_semantics = [#tpu.dimension_semantics<parallel>], iteration_bounds = array<i64: 1>, scalar_prefetch = 0 : i64, scratch_operands = 0 : i64, tpu.core_type = #tpu.core_type<tc>, window_params = [{transform_indices = @transform_0, window_bounds = array<i64: 1, 256>}, {pipeline_mode = #tpu.pipeline_mode<synchronous>, transform_indices = @transform_1, window_bounds = array<i64: 32, 1>}, {pipeline_mode = #tpu.pipeline_mode<synchronous>, transform_indices = @transform_2, window_bounds = array<i64: 32, 1>}, {pipeline_mode = #tpu.pipeline_mode<synchronous>, transform_indices = @transform_3, window_bounds = array<i64: 3, 32, 32>}, {pipeline_mode = #tpu.pipeline_mode<synchronous>, transform_indices = @transform_4, window_bounds = array<i64: 3, 32, 1>}, {pipeline_mode = #tpu.pipeline_mode<synchronous>, transform_indices = @transform_5, window_bounds = array<i64: 32, 1>}, {pipeline_mode = #tpu.pipeline_mode<synchronous>, transform_indices = @transform_6, window_bounds = array<i64: 1, 1>}, {transform_indices = @transform_7, window_bounds = array<i64: 1, 256>}]} {
    %c0 = arith.constant 0 : index
    %c0_0 = arith.constant 0 : index
    %0 = vector.load %arg1[%c0, %c0_0] : memref<1x256xf32, #tpu.memory_space<vmem>>, vector<1x256xf32>
    %c0_1 = arith.constant 0 : index
    %c0_2 = arith.constant 0 : index
    %1 = vector.load %arg2[%c0_1, %c0_2] : memref<32x1xf32, #tpu.memory_space<vmem>>, vector<32x1xf32>
    %2 = vector.broadcast %1 : vector<32x1xf32> to vector<32x256xf32>
    %3 = vector.broadcast %0 : vector<1x256xf32> to vector<32x256xf32>
    %4 = arith.mulf %2, %3 : vector<32x256xf32>
    %c0_3 = arith.constant 0 : index
    %c0_4 = arith.constant 0 : index
    %5 = vector.load %arg3[%c0_3, %c0_4] : memref<32x1xf32, #tpu.memory_space<vmem>>, vector<32x1xf32>
    %6 = vector.broadcast %5 : vector<32x1xf32> to vector<32x256xf32>
    %7 = arith.addf %4, %6 : vector<32x256xf32>
    %cst = arith.constant 5.000000e-01 : f32
    %8 = vector.broadcast %cst : f32 to vector<32x256xf32>
    %9 = arith.mulf %8, %7 : vector<32x256xf32>
    %10 = math.tanh %9 : vector<32x256xf32>
    %cst_5 = arith.constant 5.000000e-01 : f32
    %11 = vector.broadcast %cst_5 : f32 to vector<32x256xf32>
    %12 = arith.mulf %11, %10 : vector<32x256xf32>
    %cst_6 = arith.constant 5.000000e-01 : f32
    %13 = vector.broadcast %cst_6 : f32 to vector<32x256xf32>
    %14 = arith.addf %12, %13 : vector<32x256xf32>
    %c0_7 = arith.constant 0 : index
    %c0_8 = arith.constant 0 : index
    %c0_9 = arith.constant 0 : index
    %15 = vector.load %arg4[%c0_7, %c0_8, %c0_9] : memref<3x32x32xf32, #tpu.memory_space<vmem>>, vector<1x32x32xf32>
    %16 = vector.shape_cast %15 : vector<1x32x32xf32> to vector<32x32xf32>
    %cst_10 = arith.constant dense<0.000000e+00> : vector<32x256xf32>
    %17 = tpu.matmul %16, %14, %cst_10 {dimension_numbers = #tpu.dot_dimension_numbers<[1], [0], [0], [1], [0, 0, 1, 1], [], []>} : vector<32x32xf32>, vector<32x256xf32>, vector<32x256xf32> -> vector<32x256xf32>
    %c0_11 = arith.constant 0 : index
    %c0_12 = arith.constant 0 : index
    %c0_13 = arith.constant 0 : index
    %18 = vector.load %arg5[%c0_11, %c0_12, %c0_13] : memref<3x32x1xf32, #tpu.memory_space<vmem>>, vector<1x32x1xf32>
    %19 = vector.shape_cast %18 : vector<1x32x1xf32> to vector<32x1xf32>
    %20 = vector.broadcast %19 : vector<32x1xf32> to vector<32x256xf32>
    %21 = arith.addf %17, %20 : vector<32x256xf32>
    %cst_14 = arith.constant 5.000000e-01 : f32
    %22 = vector.broadcast %cst_14 : f32 to vector<32x256xf32>
    %23 = arith.mulf %22, %21 : vector<32x256xf32>
    %24 = math.tanh %23 : vector<32x256xf32>
    %cst_15 = arith.constant 5.000000e-01 : f32
    %25 = vector.broadcast %cst_15 : f32 to vector<32x256xf32>
    %26 = arith.mulf %25, %24 : vector<32x256xf32>
    %cst_16 = arith.constant 5.000000e-01 : f32
    %27 = vector.broadcast %cst_16 : f32 to vector<32x256xf32>
    %28 = arith.addf %26, %27 : vector<32x256xf32>
    %c1 = arith.constant 1 : index
    %c0_17 = arith.constant 0 : index
    %c0_18 = arith.constant 0 : index
    %29 = vector.load %arg4[%c1, %c0_17, %c0_18] : memref<3x32x32xf32, #tpu.memory_space<vmem>>, vector<1x32x32xf32>
    %30 = vector.shape_cast %29 : vector<1x32x32xf32> to vector<32x32xf32>
    %cst_19 = arith.constant dense<0.000000e+00> : vector<32x256xf32>
    %31 = tpu.matmul %30, %28, %cst_19 {dimension_numbers = #tpu.dot_dimension_numbers<[1], [0], [0], [1], [0, 0, 1, 1], [], []>} : vector<32x32xf32>, vector<32x256xf32>, vector<32x256xf32> -> vector<32x256xf32>
    %c1_20 = arith.constant 1 : index
    %c0_21 = arith.constant 0 : index
    %c0_22 = arith.constant 0 : index
    %32 = vector.load %arg5[%c1_20, %c0_21, %c0_22] : memref<3x32x1xf32, #tpu.memory_space<vmem>>, vector<1x32x1xf32>
    %33 = vector.shape_cast %32 : vector<1x32x1xf32> to vector<32x1xf32>
    %34 = vector.broadcast %33 : vector<32x1xf32> to vector<32x256xf32>
    %35 = arith.addf %31, %34 : vector<32x256xf32>
    %cst_23 = arith.constant 5.000000e-01 : f32
    %36 = vector.broadcast %cst_23 : f32 to vector<32x256xf32>
    %37 = arith.mulf %36, %35 : vector<32x256xf32>
    %38 = math.tanh %37 : vector<32x256xf32>
    %cst_24 = arith.constant 5.000000e-01 : f32
    %39 = vector.broadcast %cst_24 : f32 to vector<32x256xf32>
    %40 = arith.mulf %39, %38 : vector<32x256xf32>
    %cst_25 = arith.constant 5.000000e-01 : f32
    %41 = vector.broadcast %cst_25 : f32 to vector<32x256xf32>
    %42 = arith.addf %40, %41 : vector<32x256xf32>
    %c2 = arith.constant 2 : index
    %c0_26 = arith.constant 0 : index
    %c0_27 = arith.constant 0 : index
    %43 = vector.load %arg4[%c2, %c0_26, %c0_27] : memref<3x32x32xf32, #tpu.memory_space<vmem>>, vector<1x32x32xf32>
    %44 = vector.shape_cast %43 : vector<1x32x32xf32> to vector<32x32xf32>
    %cst_28 = arith.constant dense<0.000000e+00> : vector<32x256xf32>
    %45 = tpu.matmul %44, %42, %cst_28 {dimension_numbers = #tpu.dot_dimension_numbers<[1], [0], [0], [1], [0, 0, 1, 1], [], []>} : vector<32x32xf32>, vector<32x256xf32>, vector<32x256xf32> -> vector<32x256xf32>
    %c2_29 = arith.constant 2 : index
    %c0_30 = arith.constant 0 : index
    %c0_31 = arith.constant 0 : index
    %46 = vector.load %arg5[%c2_29, %c0_30, %c0_31] : memref<3x32x1xf32, #tpu.memory_space<vmem>>, vector<1x32x1xf32>
    %47 = vector.shape_cast %46 : vector<1x32x1xf32> to vector<32x1xf32>
    %48 = vector.broadcast %47 : vector<32x1xf32> to vector<32x256xf32>
    %49 = arith.addf %45, %48 : vector<32x256xf32>
    %cst_32 = arith.constant 5.000000e-01 : f32
    %50 = vector.broadcast %cst_32 : f32 to vector<32x256xf32>
    %51 = arith.mulf %50, %49 : vector<32x256xf32>
    %52 = math.tanh %51 : vector<32x256xf32>
    %cst_33 = arith.constant 5.000000e-01 : f32
    %53 = vector.broadcast %cst_33 : f32 to vector<32x256xf32>
    %54 = arith.mulf %53, %52 : vector<32x256xf32>
    %cst_34 = arith.constant 5.000000e-01 : f32
    %55 = vector.broadcast %cst_34 : f32 to vector<32x256xf32>
    %56 = arith.addf %54, %55 : vector<32x256xf32>
    %c0_35 = arith.constant 0 : index
    %c0_36 = arith.constant 0 : index
    %57 = vector.load %arg6[%c0_35, %c0_36] : memref<32x1xf32, #tpu.memory_space<vmem>>, vector<32x1xf32>
    %58 = vector.broadcast %57 : vector<32x1xf32> to vector<32x256xf32>
    %59 = arith.mulf %58, %56 : vector<32x256xf32>
    %cst_37 = arith.constant dense<0.000000e+00> : vector<256xf32>
    %60 = vector.multi_reduction <add>, %59, %cst_37 [0] : vector<32x256xf32> to vector<256xf32>
    %61 = vector.shape_cast %60 : vector<256xf32> to vector<1x256xf32>
    %c0_38 = arith.constant 0 : index
    %c0_39 = arith.constant 0 : index
    %62 = vector.load %arg7[%c0_38, %c0_39] : memref<1x1xf32, #tpu.memory_space<vmem>>, vector<1x1xf32>
    %63 = vector.broadcast %62 : vector<1x1xf32> to vector<1x256xf32>
    %64 = arith.addf %61, %63 : vector<1x256xf32>
    %c0_40 = arith.constant 0 : index
    %c0_41 = arith.constant 0 : index
    %65 = vector.load %arg8[%c0_40, %c0_41] : memref<1x256xf32, #tpu.memory_space<vmem>>, vector<1x256xf32>
    tpu.vector_store %arg8[%c0_40, %c0_41], %64 {strides = array<i32>} : memref<1x256xf32, #tpu.memory_space<vmem>>, vector<1x256xf32>,
    return
  }
  func.func @transform_0(%arg0: i32) -> (i32, i32) {
    %c0_i32 = arith.constant 0 : i32
    %c0_i32_0 = arith.constant 0 : i32
    return %c0_i32, %arg0 : i32, i32
  }
  func.func @transform_1(%arg0: i32) -> (i32, i32) {
    %c0_i32 = arith.constant 0 : i32
    %c0_i32_0 = arith.constant 0 : i32
    %c0_i32_1 = arith.constant 0 : i32
    return %c0_i32, %c0_i32_0 : i32, i32
  }
  func.func @transform_2(%arg0: i32) -> (i32, i32) {
    %c0_i32 = arith.constant 0 : i32
    %c0_i32_0 = arith.constant 0 : i32
    %c0_i32_1 = arith.constant 0 : i32
    return %c0_i32, %c0_i32_0 : i32, i32
  }
  func.func @transform_3(%arg0: i32) -> (i32, i32, i32) {
    %c0_i32 = arith.constant 0 : i32
    %c0_i32_0 = arith.constant 0 : i32
    %c0_i32_1 = arith.constant 0 : i32
    %c0_i32_2 = arith.constant 0 : i32
    return %c0_i32, %c0_i32_0, %c0_i32_1 : i32, i32, i32
  }
  func.func @transform_4(%arg0: i32) -> (i32, i32, i32) {
    %c0_i32 = arith.constant 0 : i32
    %c0_i32_0 = arith.constant 0 : i32
    %c0_i32_1 = arith.constant 0 : i32
    %c0_i32_2 = arith.constant 0 : i32
    return %c0_i32, %c0_i32_0, %c0_i32_1 : i32, i32, i32
  }
  func.func @transform_5(%arg0: i32) -> (i32, i32) {
    %c0_i32 = arith.constant 0 : i32
    %c0_i32_0 = arith.constant 0 : i32
    %c0_i32_1 = arith.constant 0 : i32
    return %c0_i32, %c0_i32_0 : i32, i32
  }
  func.func @transform_6(%arg0: i32) -> (i32, i32) {
    %c0_i32 = arith.constant 0 : i32
    %c0_i32_0 = arith.constant 0 : i32
    %c0_i32_1 = arith.constant 0 : i32
    return %c0_i32, %c0_i32_0 : i32, i32
  }
  func.func @transform_7(%arg0: i32) -> (i32, i32) {
    %c0_i32 = arith.constant 0 : i32
    %c0_i32_0 = arith.constant 0 : i32
    return %c0_i32, %arg0 : i32, i32
  }
}

</mosaic_0001>

<bundles_post_ra>
// kernel: tpu_custom_call.1
= control target key start
LH: loop header
LB: loop body
LE: loop exit
PB: predicated region body
PF: predicated region fallthrough
CT: control target
= control target key end

     0   :  { %s1079_s0 = inlined_call_operand.vmem [shape: f32[1,256], index: 0, kind: input, shape index: {}]   ;;  %s1080_s1 = inlined_call_operand.vmem [shape: f32[32,1], index: 1, kind: input, shape index: {}]   ;;  %s1081_s2 = inlined_call_operand.vmem [shape: f32[32,1], index: 2, kind: input, shape index: {}]   ;;  %s1082_s3 = inlined_call_operand.vmem [shape: f32[3,32,32], index: 3, kind: input, shape index: {}]   ;;  %s1083_s4 = inlined_call_operand.vmem [shape: f32[3,32,1], index: 4, kind: input, shape index: {}]   ;;  %s1084_s5 = inlined_call_operand.vmem [shape: f32[32,1], index: 5, kind: input, shape index: {}]   ;;  %s1085_s6 = inlined_call_operand.<no memory space> [shape: f32[1,1], index: 6, kind: input, shape index: {}]   ;;  %s1086_s7 = inlined_call_operand.hbm [shape: f32[1,256], index: 7, kind: output, shape index: {}]  }
   0x1   :  { %v12_v0 = vstv %s1085_s6 }
   0x2   :  { %13 = vst [vmem:[#allocation2] sm:$0x1] %v12_v0 }
   0x3   :  { %v73_v1 = vld [vmem:[%s1081_s2] sm:$0xff]  ;;  %v874_v3 = vmov 0   ;;  %v74_v4 = vld [vmem:[%s1081_s2 + $0x8] sm:$0xff]  ;;  %v33_v6 = vld [vmem:[%s1080_s1 + $0x18] sm:$0xff] }
   0x4   :  { %v30_v2 = vld [vmem:[%s1080_s1] sm:$0xff]  ;;  %785 = vset.pattern.permute.xlu1 %v874_v3  ;;  %784 = vset.pattern.permute.xlu0 %v874_v3  ;;  %v31_v5 = vld [vmem:[%s1080_s1 + $0x8] sm:$0xff]  ;;  %v32_v7 = vld [vmem:[%s1080_s1 + $0x10] sm:$0xff] }
   0x5   :  { %79 = vperm.xlu1 %785, %v73_v1   ;;  %36 = vperm.xlu0 %784, %v30_v2  }
   0x9   :  { %84 = vperm.xlu1 %785, %v74_v4   ;;  %41 = vperm.xlu0 %784, %v31_v5  }
   0xa   :  { %14 = vsyncpa [#allocation4], 0  ;;  %v76_v8 = vld [vmem:[%s1081_s2 + $0x18] sm:$0xff]  ;;  %v75_v9 = vld [vmem:[%s1081_s2 + $0x10] sm:$0xff]  ;;  %v875_v24 = vmov 0.0   ;;  %v55_v28 = vlaneseq  ;;  %vm165_vm0 = vcmask 261120  }
   0xb   :  { %v142_v10 = vld [vmem:[%s1083_s4 + $0x8] sm:$0xff]  ;;  %v141_v11 = vld [vmem:[%s1083_s4] sm:$0xff]  ;;  %v144_v12 = vld [vmem:[%s1083_s4 + $0x18] sm:$0xff]  ;;  %242 = vmatprep.mubr.f32.mxu0 %v875_v24  ;;  %254 = vmatprep.mubr.f32.mxu1 %v875_v24 }
   0xc   :  { %v143_v13 = vld [vmem:[%s1083_s4 + $0x10] sm:$0xff]  ;;  %v733_v14 = vld [vmem:[%s1083_s4 + $0x28] sm:$0xff]  ;;  %v732_v15 = vld [vmem:[%s1083_s4 + $0x20] sm:$0xff]  ;;  %v996_v29 = vshrl.u32 %v55_v28, 7  ;;  %vm707_vm1 = vcmp.lt.s32.totalorder %v55_v28, 256 }
   0xd   :  { %51 = vperm.xlu1 %785, %v33_v6   ;;  %46 = vperm.xlu0 %784, %v32_v7   ;;  %v735_v16 = vld [vmem:[%s1083_s4 + $0x38] sm:$0xff]  ;;  %v734_v17 = vld [vmem:[%s1083_s4 + $0x30] sm:$0xff]  ;;  %v745_v18 = vld [vmem:[%s1083_s4 + $0x48] sm:$0xff] }
   0xe   :  { %v744_v19 = vld [vmem:[%s1083_s4 + $0x40] sm:$0xff]  ;;  %v747_v20 = vld [vmem:[%s1083_s4 + $0x58] sm:$0xff]  ;;  %v746_v21 = vld [vmem:[%s1083_s4 + $0x50] sm:$0xff]  ;;  %v57_v30 = vsub.s32 0, %v996_v29  ;;  %v61_v31 = vsub.s32 1, %v996_v29 }
   0xf   :  { %v626_v22 = vld [vmem:[%s1084_s5 + $0x8] sm:$0xff]  ;;  %v625_v23 = vld [vmem:[%s1084_s5] sm:$0xff]  ;;  %v628_v25 = vld [vmem:[%s1084_s5 + $0x18] sm:$0xff] }
  0x10   :  { %v627_v26 = vld [vmem:[%s1084_s5 + $0x10] sm:$0xff]  ;;  %v675_v27 = vld [vmem:[#allocation2] sm:$0x1] }
  0x11   :  { %94 = vperm.xlu1 %785, %v76_v8   ;;  %89 = vperm.xlu0 %784, %v75_v9   ;;  %v29_v32 = vld [vmem:[%s1079_s0] sm:$0x3] }
  0x12   :  { %v58_v33 = vrot.slane %v29_v32, %v57_v30  ;;  %v62_v34 = vrot.slane %v29_v32, %v61_v31 }
  0x15   :  { %152 = vperm.xlu1 %785, %v142_v10   ;;  %147 = vperm.xlu0 %784, %v141_v11  }
  0x19   :  { %162 = vperm.xlu1 %785, %v144_v12   ;;  %157 = vperm.xlu0 %784, %v143_v13  }
  0x1d   :  { %316 = vperm.xlu1 %785, %v733_v14   ;;  %311 = vperm.xlu0 %784, %v732_v15  }
  0x21   :  { %326 = vperm.xlu1 %785, %v735_v16   ;;  %321 = vperm.xlu0 %784, %v734_v17  }
  0x25   :  { %479 = vperm.xlu1 %785, %v745_v18   ;;  %474 = vperm.xlu0 %784, %v744_v19  }
  0x29   :  { %489 = vperm.xlu1 %785, %v747_v20   ;;  %484 = vperm.xlu0 %784, %v746_v21  }
  0x2d   :  { %636 = vperm.xlu1 %785, %v626_v22   ;;  %631 = vperm.xlu0 %784, %v625_v23  }
  0x31   :  { %646 = vperm.xlu1 %785, %v628_v25   ;;  %641 = vperm.xlu0 %784, %v627_v26  }
  0x35   :  { %678 = vperm.xlu0 %784, %v675_v27  }
  0x84   :  { %v80_v35 = vpop.permute.xlu1 %79  ;;  %v37_v36 = vpop.permute.xlu0 %36 }
  0x85   :  { %v65_v37 = vmul.f32 %v58_v33, %v37_v36  ;;  %v66_v38 = vmul.f32 %v62_v34, %v37_v36  ;;  %v139_v36 = vld [vmem:[%s1082_s3 + $0x10] sm:$0xff] }
  0x87   :  { %v97_v39 = vadd.f32 %v80_v35, %v65_v37  ;;  %v98_v40 = vadd.f32 %v80_v35, %v66_v38  ;;  %v137_v35 = vld [vmem:[%s1082_s3] sm:$0xff]  ;;  %v138_v37 = vld [vmem:[%s1082_s3 + $0x8] sm:$0xff]  ;;  %v140_v38 = vld [vmem:[%s1082_s3 + $0x18] sm:$0xff] }
  0x88   :  { %v85_v41 = vpop.permute.xlu1 %84  ;;  %v42_v42 = vpop.permute.xlu0 %41 }
  0x89   :  { %v105_v43 = vmul.f32 0.5, %v97_v39  ;;  %v106_v44 = vmul.f32 0.5, %v98_v40  ;;  %v67_v45 = vmul.f32 %v58_v33, %v42_v42  ;;  %v68_v46 = vmul.f32 %v62_v34, %v42_v42 }
  0x8b   :  { %786 = vtanh.f32 %v105_v43  ;;  %v99_v47 = vadd.f32 %v85_v41, %v67_v45  ;;  %v100_v48 = vadd.f32 %v85_v41, %v68_v46 }
  0x8c   :  { %788 = vtanh.f32 %v106_v44  ;;  %v52_v49 = vpop.permute.xlu1 %51  ;;  %v47_v50 = vpop.permute.xlu0 %46 }
  0x8d   :  { %v107_v51 = vmul.f32 0.5, %v99_v47  ;;  %v108_v52 = vmul.f32 0.5, %v100_v48  ;;  %v71_v53 = vmul.f32 %v58_v33, %v52_v49  ;;  %v72_v54 = vmul.f32 %v62_v34, %v52_v49 }
  0x8e   :  { %v69_v55 = vmul.f32 %v58_v33, %v47_v50  ;;  %v70_v56 = vmul.f32 %v62_v34, %v47_v50 }
  0x8f   :  { %790 = vtanh.f32 %v107_v51 }
  0x90   :  { %792 = vtanh.f32 %v108_v52  ;;  %v95_v57 = vpop.permute.xlu1 %94  ;;  %v90_v58 = vpop.permute.xlu0 %89 }
  0x91   :  { %v103_v59 = vadd.f32 %v95_v57, %v71_v53  ;;  %v104_v60 = vadd.f32 %v95_v57, %v72_v54  ;;  %v101_v61 = vadd.f32 %v90_v58, %v69_v55  ;;  %v102_v62 = vadd.f32 %v90_v58, %v70_v56 }
  0x93   :  { %v111_v63 = vmul.f32 0.5, %v103_v59  ;;  %v112_v0 = vmul.f32 0.5, %v104_v60  ;;  %v109_v1 = vmul.f32 0.5, %v101_v61  ;;  %v110_v2 = vmul.f32 0.5, %v102_v62 }
  0x94   :  { %v148_v39 = vpop.permute.xlu0 %147  ;;  %v153_v40 = vpop.permute.xlu1 %152 }
  0x95   :  { %v787_v3 = vpop.eup %786  ;;  %794 = vtanh.f32 %v111_v63 }
  0x96   :  { %v789_v4 = vpop.eup %788  ;;  %796 = vtanh.f32 %v112_v0  ;;  %v121_v5 = vmul.f32 0.5, %v787_v3 }
  0x97   :  { %798 = vtanh.f32 %v109_v1  ;;  %v122_v7 = vmul.f32 0.5, %v789_v4 }
  0x98   :  { %800 = vtanh.f32 %v110_v2  ;;  %v129_v11 = vadd.f32 0.5, %v121_v5  ;;  %v158_v41 = vpop.permute.xlu0 %157  ;;  %v163_v50 = vpop.permute.xlu1 %162 }
  0x99   :  { %v791_v6 = vpop.eup %790  ;;  %v130_v13 = vadd.f32 0.5, %v122_v7 }
  0x9a   :  { %v793_v8 = vpop.eup %792  ;;  %v123_v9 = vmul.f32 0.5, %v791_v6 }
  0x9b   :  { %v124_v10 = vmul.f32 0.5, %v793_v8 }
  0x9c   :  { %v131_v12 = vadd.f32 0.5, %v123_v9 }
  0x9d   :  { %v132_v14 = vadd.f32 0.5, %v124_v10 }
  0x9e   :  { %v754_v15 = vpack.c.bf16 %v131_v12, %v129_v11 }
  0x9f   :  { %v795_v16 = vpop.eup %794  ;;  %v752_v17 = vpack.c.bf16 %v132_v14, %v130_v13 }
  0xa0   :  { %v797_v18 = vpop.eup %796  ;;  %v127_v19 = vmul.f32 0.5, %v795_v16 }
  0xa1   :  { %v799_v20 = vpop.eup %798  ;;  %v128_v21 = vmul.f32 0.5, %v797_v18  ;;  %753 = vmatprep.subr.bf16.mxu0 %v752_v17  ;;  %776 = vmatprep.subr.bf16.mxu1 %v752_v17 }
  0xa2   :  { %v801_v22 = vpop.eup %800  ;;  %v125_v23 = vmul.f32 0.5, %v799_v20  ;;  %755 = vmatpush1.bf16.msra.mxu0 %v754_v15  ;;  %778 = vmatpush1.bf16.msra.mxu1 %v754_v15  ;;  %v135_v25 = vadd.f32 0.5, %v127_v19 }
  0xa3   :  { %v126_v26 = vmul.f32 0.5, %v801_v22  ;;  %v136_v27 = vadd.f32 0.5, %v128_v21 }
  0xa4   :  { %v133_v31 = vadd.f32 0.5, %v125_v23 }
  0xa5   :  { %v134_v32 = vadd.f32 0.5, %v126_v26 }
  0xa6   :  { %v758_v33 = vpack.c.bf16 %v135_v25, %v133_v31 }
  0xa7   :  { %v756_v34 = vpack.c.bf16 %v136_v27, %v134_v32 }
  0xa9   :  { %757 = vmatprep.subr.bf16.mxu0 %v756_v34  ;;  %777 = vmatprep.subr.bf16.mxu1 %v756_v34 }
  0xaa   :  { %759 = vmatpush1.bf16.msra.mxu0 %v758_v33  ;;  %779 = vmatpush1.bf16.msra.mxu1 %v758_v33 }
  0xad   :  { %724 = vmatmul.mubr.msk.f32.vlgmr.msra.gmra.mrb[0].mxu0 %vm165_vm0, %v137_v35  ;;  %726 = vmatmul.mubr.msk.f32.vlgmr.msra.gmra.mrb[0].mxu1 %vm165_vm0, %v139_v36  ;;  %v728_v35 = vld [vmem:[%s1082_s3 + $0x20] sm:$0xff]  ;;  %v729_v36 = vld [vmem:[%s1082_s3 + $0x28] sm:$0xff] }
  0xae   :  { %248 = vmatprep.mubr.f32.mxu0 %v875_v24  ;;  %260 = vmatprep.mubr.f32.mxu1 %v875_v24 }
  0xb1   :  { %725 = vmatmul.mubr.msk.f32.gmra.mrb[2].mxu0 %vm165_vm0, %v138_v37  ;;  %727 = vmatmul.mubr.msk.f32.gmra.mrb[2].mxu1 %vm165_vm0, %v140_v38  ;;  %v730_v37 = vld [vmem:[%s1082_s3 + $0x30] sm:$0xff]  ;;  %v731_v38 = vld [vmem:[%s1082_s3 + $0x38] sm:$0xff] }
  0xb2   :  { %405 = vmatprep.mubr.f32.mxu1 %v875_v24  ;;  %568 = vmatprep.mubr.f32.mxu0 %v875_v24 }
 0x180   :  { %v244_v42 = vpop.f32.mrb[0].mxu0  ;;  %v256_v43 = vpop.f32.mrb[0].mxu1 }
 0x181   :  { %v245_v44 = vadd.f32 %v244_v42, %v148_v39  ;;  %v257_v45 = vadd.f32 %v256_v43, %v158_v41  ;;  %v246_v46 = vpop.f32.mrb[1].mxu0  ;;  %v258_v47 = vpop.f32.mrb[1].mxu1 }
 0x182   :  { %v247_v48 = vadd.f32 %v246_v46, %v148_v39  ;;  %v259_v49 = vadd.f32 %v258_v47, %v158_v41  ;;  %v312_v39 = vpop.permute.xlu0 %311 }
 0x183   :  { %v267_v51 = vmul.f32 0.5, %v245_v44  ;;  %v271_v52 = vmul.f32 0.5, %v257_v45  ;;  %v317_v45 = vpop.permute.xlu1 %316 }
 0x184   :  { %v268_v53 = vmul.f32 0.5, %v247_v48  ;;  %v272_v54 = vmul.f32 0.5, %v259_v49  ;;  %v250_v55 = vpop.f32.mrb[2].mxu0  ;;  %v262_v56 = vpop.f32.mrb[2].mxu1 }
 0x185   :  { %802 = vtanh.f32 %v267_v51  ;;  %v251_v57 = vadd.f32 %v250_v55, %v153_v40  ;;  %v263_v58 = vadd.f32 %v262_v56, %v163_v50  ;;  %v252_v59 = vpop.f32.mrb[3].mxu0  ;;  %v264_v60 = vpop.f32.mrb[3].mxu1 }
 0x186   :  { %804 = vtanh.f32 %v271_v52  ;;  %v253_v61 = vadd.f32 %v252_v59, %v153_v40  ;;  %v265_v62 = vadd.f32 %v264_v60, %v163_v50  ;;  %v322_v52 = vpop.permute.xlu0 %321 }
 0x187   :  { %806 = vtanh.f32 %v268_v53  ;;  %v269_v63 = vmul.f32 0.5, %v251_v57  ;;  %v273_v0 = vmul.f32 0.5, %v263_v58  ;;  %v327_v59 = vpop.permute.xlu1 %326 }
 0x188   :  { %808 = vtanh.f32 %v272_v54  ;;  %v270_v1 = vmul.f32 0.5, %v253_v61  ;;  %v274_v2 = vmul.f32 0.5, %v265_v62 }
 0x189   :  { %810 = vtanh.f32 %v269_v63 }
 0x18a   :  { %812 = vtanh.f32 %v273_v0 }
 0x18b   :  { %814 = vtanh.f32 %v270_v1 }
 0x18c   :  { %816 = vtanh.f32 %v274_v2 }
 0x18f   :  { %v803_v3 = vpop.eup %802 }
 0x190   :  { %v805_v4 = vpop.eup %804  ;;  %v283_v7 = vmul.f32 0.5, %v803_v3 }
 0x191   :  { %v807_v5 = vpop.eup %806  ;;  %v287_v9 = vmul.f32 0.5, %v805_v4 }
 0x192   :  { %v809_v6 = vpop.eup %808  ;;  %v284_v11 = vmul.f32 0.5, %v807_v5  ;;  %v291_v17 = vadd.f32 0.5, %v283_v7 }
 0x193   :  { %v811_v8 = vpop.eup %810  ;;  %v288_v14 = vmul.f32 0.5, %v809_v6  ;;  %v295_v20 = vadd.f32 0.5, %v287_v9 }
 0x194   :  { %v813_v10 = vpop.eup %812  ;;  %v285_v12 = vmul.f32 0.5, %v811_v8  ;;  %v292_v23 = vadd.f32 0.5, %v284_v11 }
 0x195   :  { %v815_v13 = vpop.eup %814  ;;  %v289_v15 = vmul.f32 0.5, %v813_v10  ;;  %v296_v27 = vadd.f32 0.5, %v288_v14 }
 0x196   :  { %v817_v16 = vpop.eup %816  ;;  %v293_v18 = vadd.f32 0.5, %v285_v12  ;;  %v286_v19 = vmul.f32 0.5, %v815_v13 }
 0x197   :  { %v297_v21 = vadd.f32 0.5, %v289_v15  ;;  %v290_v22 = vmul.f32 0.5, %v817_v16 }
 0x198   :  { %v762_v25 = vpack.c.bf16 %v293_v18, %v291_v17  ;;  %v294_v26 = vadd.f32 0.5, %v286_v19 }
 0x199   :  { %v766_v31 = vpack.c.bf16 %v297_v21, %v295_v20  ;;  %v298_v32 = vadd.f32 0.5, %v290_v22 }
 0x19a   :  { %v760_v33 = vpack.c.bf16 %v294_v26, %v292_v23 }
 0x19b   :  { %v764_v34 = vpack.c.bf16 %v298_v32, %v296_v27 }
 0x19c   :  { %761 = vmatprep.subr.bf16.mxu1 %v760_v33 }
 0x19d   :  { %763 = vmatpush1.bf16.msra.mxu1 %v762_v25 }
 0x19e   :  { %765 = vmatprep.subr.bf16.mxu1 %v764_v34 }
 0x1a1   :  { %767 = vmatpush1.bf16.msra.mxu1 %v766_v31 }
 0x1a4   :  { %736 = vmatmul.mubr.msk.f32.vlgmr.msra.gmra.mrb[4].mxu1 %vm165_vm0, %v728_v35  ;;  %v740_v35 = vld [vmem:[%s1082_s3 + $0x40] sm:$0xff] }
 0x1a5   :  { %411 = vmatprep.mubr.f32.mxu1 %v875_v24 }
 0x1a8   :  { %737 = vmatmul.mubr.msk.f32.gmra.mrb[6].mxu1 %vm165_vm0, %v729_v36  ;;  %v741_v36 = vld [vmem:[%s1082_s3 + $0x48] sm:$0xff] }
 0x1a9   :  { %417 = vmatprep.mubr.f32.mxu1 %v875_v24 }
 0x1ac   :  { %738 = vmatmul.mubr.msk.f32.gmra.mrb[8].mxu1 %vm165_vm0, %v730_v37  ;;  %v742_v37 = vld [vmem:[%s1082_s3 + $0x50] sm:$0xff] }
 0x1ad   :  { %423 = vmatprep.mubr.f32.mxu1 %v875_v24 }
 0x1b0   :  { %739 = vmatmul.mubr.msk.f32.gmra.mrb[10].mxu1 %vm165_vm0, %v731_v38  ;;  %v743_v38 = vld [vmem:[%s1082_s3 + $0x58] sm:$0xff]  ;;  %s877_s3 = smov [#allocation3]  }
 0x1b1   :  { %s716_s21 = sshll.u32 %s877_s3, 4  ;;  %s717_s21 = int_to_ptr.vmem [resolvable:$true] %s716_s21 }
 0x1b2   :  { %s850_s4 = scalar_lea.vmem %s717_s21, 32  ;;  %p855_p1 = scmp.lt.s32.totalorder %s717_s21, %s717_s21 }
 0x1b3   :  { %p851_p0 = scmp.ne.s32.totalorder %s717_s21, %s850_s4  ;;  %p856_p2 = scmp.lt.s32.totalorder %s850_s4, %s850_s4 }
 0x1b5   :  { %p857_p3 = por %p856_p2, %p855_p1 }
 0x1b7   :  { %p858_p4 = pnand %p857_p3, %p851_p0 }
 0x277   :  { %v407_v40 = vpop.f32.mrb[4].mxu1 }
 0x278   :  { %v408_v41 = vadd.f32 %v407_v40, %v312_v39  ;;  %v409_v42 = vpop.f32.mrb[5].mxu1 }
 0x279   :  { %v410_v43 = vadd.f32 %v409_v42, %v312_v39  ;;  %v475_v39 = vpop.permute.xlu0 %474 }
 0x27a   :  { %v430_v44 = vmul.f32 0.5, %v408_v41 }
 0x27b   :  { %v431_v46 = vmul.f32 0.5, %v410_v43  ;;  %v413_v47 = vpop.f32.mrb[6].mxu1 }
 0x27c   :  { %818 = vtanh.f32 %v430_v44  ;;  %v414_v48 = vadd.f32 %v413_v47, %v317_v45  ;;  %v415_v49 = vpop.f32.mrb[7].mxu1 }
 0x27d   :  { %820 = vtanh.f32 %v431_v46  ;;  %v416_v50 = vadd.f32 %v415_v49, %v317_v45  ;;  %v480_v45 = vpop.permute.xlu1 %479 }
 0x27e   :  { %v432_v51 = vmul.f32 0.5, %v414_v48 }
 0x27f   :  { %v433_v53 = vmul.f32 0.5, %v416_v50  ;;  %v419_v54 = vpop.f32.mrb[8].mxu1 }
 0x280   :  { %822 = vtanh.f32 %v432_v51  ;;  %v420_v55 = vadd.f32 %v419_v54, %v322_v52  ;;  %v421_v56 = vpop.f32.mrb[9].mxu1  ;;  %v485_v51 = vpop.permute.xlu0 %484 }
 0x281   :  { %824 = vtanh.f32 %v433_v53  ;;  %v422_v57 = vadd.f32 %v421_v56, %v322_v52 }
 0x282   :  { %v434_v58 = vmul.f32 0.5, %v420_v55 }
 0x283   :  { %v435_v60 = vmul.f32 0.5, %v422_v57  ;;  %v425_v61 = vpop.f32.mrb[10].mxu1 }
 0x284   :  { %826 = vtanh.f32 %v434_v58  ;;  %v426_v62 = vadd.f32 %v425_v61, %v327_v59  ;;  %v427_v63 = vpop.f32.mrb[11].mxu1  ;;  %v490_v58 = vpop.permute.xlu1 %489 }
 0x285   :  { %828 = vtanh.f32 %v435_v60  ;;  %v428_v0 = vadd.f32 %v427_v63, %v327_v59 }
 0x286   :  { %v819_v1 = vpop.eup %818  ;;  %v436_v2 = vmul.f32 0.5, %v426_v62 }
 0x287   :  { %v821_v3 = vpop.eup %820  ;;  %v437_v4 = vmul.f32 0.5, %v428_v0  ;;  %v446_v5 = vmul.f32 0.5, %v819_v1 }
 0x288   :  { %830 = vtanh.f32 %v436_v2  ;;  %v447_v7 = vmul.f32 0.5, %v821_v3 }
 0x289   :  { %832 = vtanh.f32 %v437_v4  ;;  %v454_v11 = vadd.f32 0.5, %v446_v5 }
 0x28a   :  { %v823_v6 = vpop.eup %822  ;;  %v455_v14 = vadd.f32 0.5, %v447_v7 }
 0x28b   :  { %v825_v8 = vpop.eup %824  ;;  %v448_v9 = vmul.f32 0.5, %v823_v6 }
 0x28c   :  { %v449_v10 = vmul.f32 0.5, %v825_v8 }
 0x28d   :  { %v456_v12 = vadd.f32 0.5, %v448_v9 }
 0x28e   :  { %v827_v13 = vpop.eup %826  ;;  %v457_v15 = vadd.f32 0.5, %v449_v10  ;;  %v632_v10 = vpop.permute.xlu0 %631 }
 0x28f   :  { %v829_v16 = vpop.eup %828  ;;  %v770_v17 = vpack.c.bf16 %v456_v12, %v454_v11  ;;  %v450_v19 = vmul.f32 0.5, %v827_v13 }
 0x290   :  { %v768_v18 = vpack.c.bf16 %v457_v15, %v455_v14  ;;  %v451_v21 = vmul.f32 0.5, %v829_v16  ;;  %v637_v15 = vpop.permute.xlu1 %636 }
 0x291   :  { %v458_v26 = vadd.f32 0.5, %v450_v19 }
 0x292   :  { %v831_v20 = vpop.eup %830  ;;  %769 = vmatprep.subr.bf16.mxu0 %v768_v18  ;;  %v459_v31 = vadd.f32 0.5, %v451_v21 }
 0x293   :  { %v833_v22 = vpop.eup %832  ;;  %v452_v23 = vmul.f32 0.5, %v831_v20  ;;  %771 = vmatpush1.bf16.msra.mxu0 %v770_v17 }
 0x294   :  { %v453_v25 = vmul.f32 0.5, %v833_v22 }
 0x295   :  { %v460_v27 = vadd.f32 0.5, %v452_v23 }
 0x296   :  { %v461_v32 = vadd.f32 0.5, %v453_v25 }
 0x297   :  { %v774_v33 = vpack.c.bf16 %v460_v27, %v458_v26 }
 0x298   :  { %v772_v34 = vpack.c.bf16 %v461_v32, %v459_v31  ;;  %v642_v31 = vpop.permute.xlu0 %641 }
 0x29a   :  { %773 = vmatprep.subr.bf16.mxu0 %v772_v34 }
 0x29b   :  { %775 = vmatpush1.bf16.msra.mxu0 %v774_v33 }
 0x29e   :  { %748 = vmatmul.mubr.msk.f32.vlgmr.msra.gmra.mrb[4].mxu0 %vm165_vm0, %v740_v35 }
 0x29f   :  { %574 = vmatprep.mubr.f32.mxu0 %v875_v24 }
 0x2a2   :  { %749 = vmatmul.mubr.msk.f32.gmra.mrb[6].mxu0 %vm165_vm0, %v741_v36 }
 0x2a3   :  { %580 = vmatprep.mubr.f32.mxu0 %v875_v24 }
 0x2a6   :  { %750 = vmatmul.mubr.msk.f32.gmra.mrb[8].mxu0 %vm165_vm0, %v742_v37 }
 0x2a7   :  { %586 = vmatprep.mubr.f32.mxu0 %v875_v24 }
 0x2aa   :  { %751 = vmatmul.mubr.msk.f32.gmra.mrb[10].mxu0 %vm165_vm0, %v743_v38 }
 0x371   :  { %v570_v40 = vpop.f32.mrb[4].mxu0 }
 0x372   :  { %v571_v41 = vadd.f32 %v570_v40, %v475_v39  ;;  %v572_v42 = vpop.f32.mrb[5].mxu0 }
 0x373   :  { %v573_v43 = vadd.f32 %v572_v42, %v475_v39 }
 0x374   :  { %v593_v44 = vmul.f32 0.5, %v571_v41  ;;  %v647_v41 = vpop.permute.xlu1 %646 }
 0x375   :  { %v594_v46 = vmul.f32 0.5, %v573_v43  ;;  %v576_v47 = vpop.f32.mrb[6].mxu0 }
 0x376   :  { %834 = vtanh.f32 %v593_v44  ;;  %v577_v48 = vadd.f32 %v576_v47, %v480_v45  ;;  %v578_v49 = vpop.f32.mrb[7].mxu0 }
 0x377   :  { %836 = vtanh.f32 %v594_v46  ;;  %v579_v24 = vadd.f32 %v578_v49, %v480_v45 }
 0x378   :  { %v595_v50 = vmul.f32 0.5, %v577_v48 }
 0x379   :  { %v596_v52 = vmul.f32 0.5, %v579_v24  ;;  %v582_v53 = vpop.f32.mrb[8].mxu0 }
 0x37a   :  { %838 = vtanh.f32 %v595_v50  ;;  %v583_v54 = vadd.f32 %v582_v53, %v485_v51  ;;  %v584_v55 = vpop.f32.mrb[9].mxu0  ;;  %v876_v53 = vmov 1966171168  }
 0x37b   :  { %840 = vtanh.f32 %v596_v52  ;;  %v585_v56 = vadd.f32 %v584_v55, %v485_v51 }
 0x37c   :  { %v597_v57 = vmul.f32 0.5, %v583_v54  ;;  %v691_v54 = vunpack.c.l.s4 %v876_v53 }
 0x37d   :  { %v598_v59 = vmul.f32 0.5, %v585_v56  ;;  %v588_v60 = vpop.f32.mrb[10].mxu0  ;;  %v679_v56 = vpop.permute.xlu0 %678 }
 0x37e   :  { %842 = vtanh.f32 %v597_v57  ;;  %v589_v61 = vadd.f32 %v588_v60, %v490_v58  ;;  %v590_v62 = vpop.f32.mrb[11].mxu0  ;;  %v692_v60 = vunpack.c.0.s8 %v691_v54 }
 0x37f   :  { %844 = vtanh.f32 %v598_v59  ;;  %v591_v63 = vadd.f32 %v590_v62, %v490_v58 }
 0x380   :  { %v835_v0 = vpop.eup %834  ;;  %v599_v1 = vmul.f32 0.5, %v589_v61  ;;  %v684_v61 = vrot.slane %v679_v56, %v57_v30 }
 0x381   :  { %v837_v2 = vpop.eup %836  ;;  %v609_v3 = vmul.f32 0.5, %v835_v0  ;;  %v600_v4 = vmul.f32 0.5, %v591_v63 }
 0x382   :  { %v610_v5 = vmul.f32 0.5, %v837_v2  ;;  %846 = vtanh.f32 %v599_v1  ;;  %v695_v2 = vsub.s32 %v692_v60, %v996_v29 }
 0x383   :  { %848 = vtanh.f32 %v600_v4  ;;  %v617_v8 = vadd.f32 0.5, %v609_v3 }
 0x384   :  { %v839_v6 = vpop.eup %838  ;;  %v618_v11 = vadd.f32 0.5, %v610_v5 }
 0x385   :  { %v841_v7 = vpop.eup %840  ;;  %v611_v9 = vmul.f32 0.5, %v839_v6  ;;  %v649_v18 = vmul.f32 %v632_v10, %v617_v8 }
 0x386   :  { %v612_v12 = vmul.f32 0.5, %v841_v7  ;;  %v650_v21 = vmul.f32 %v632_v10, %v618_v11 }
 0x387   :  { %v619_v13 = vadd.f32 0.5, %v611_v9 }
 0x388   :  { %v843_v14 = vpop.eup %842  ;;  %v620_v16 = vadd.f32 0.5, %v612_v12 }
 0x389   :  { %v845_v17 = vpop.eup %844  ;;  %v651_v19 = vmul.f32 %v637_v15, %v619_v13  ;;  %v613_v20 = vmul.f32 0.5, %v843_v14 }
 0x38a   :  { %v652_v22 = vmul.f32 %v637_v15, %v620_v16  ;;  %v614_v23 = vmul.f32 0.5, %v845_v17 }
 0x38b   :  { %v657_v25 = vadd.f32 %v651_v19, %v649_v18  ;;  %v621_v26 = vadd.f32 0.5, %v613_v20 }
 0x38c   :  { %v847_v27 = vpop.eup %846  ;;  %v666_v32 = vadd.f32 %v652_v22, %v650_v21  ;;  %v622_v33 = vadd.f32 0.5, %v614_v23 }
 0x38d   :  { %v849_v34 = vpop.eup %848  ;;  %v653_v35 = vmul.f32 %v642_v31, %v621_v26  ;;  %v615_v36 = vmul.f32 0.5, %v847_v27 }
 0x38e   :  { %v654_v37 = vmul.f32 %v642_v31, %v622_v33  ;;  %v616_v38 = vmul.f32 0.5, %v849_v34 }
 0x38f   :  { %v658_v39 = vadd.f32 %v657_v25, %v653_v35  ;;  %v623_v40 = vadd.f32 0.5, %v615_v36 }
 0x390   :  { %v667_v42 = vadd.f32 %v666_v32, %v654_v37  ;;  %v624_v43 = vadd.f32 0.5, %v616_v38 }
 0x391   :  { %v655_v44 = vmul.f32 %v647_v41, %v623_v40 }
 0x392   :  { %v656_v45 = vmul.f32 %v647_v41, %v624_v43 }
 0x393   :  { %v659_v46 = vadd.f32 %v658_v39, %v655_v44 }
 0x394   :  { %v668_v47 = vadd.f32 %v667_v42, %v656_v45 }
 0x395   :  { %v660_v48 = vrot.slane %v659_v46, 4 }
 0x396   :  { %v669_v49 = vrot.slane %v668_v47, 4 }
 0x397   :  { %v661_v24 = vadd.f32 %v660_v48, %v659_v46 }
 0x398   :  { %v670_v50 = vadd.f32 %v669_v49, %v668_v47 }
 0x399   :  { %v662_v51 = vrot.slane %v661_v24, 2 }
 0x39a   :  { %v671_v52 = vrot.slane %v670_v50, 2 }
 0x39b   :  { %v663_v55 = vadd.f32 %v662_v51, %v661_v24 }
 0x39c   :  { %v672_v57 = vadd.f32 %v671_v52, %v670_v50 }
 0x39d   :  { %v664_v58 = vrot.slane %v663_v55, 1 }
 0x39e   :  { %v673_v59 = vrot.slane %v672_v57, 1 }
 0x39f   :  { %v665_v62 = vadd.f32 %v664_v58, %v663_v55 }
 0x3a0   :  { %v674_v63 = vadd.f32 %v673_v59, %v672_v57 }
 0x3a1   :  { %v685_v0 = vadd.f32 %v684_v61, %v665_v62 }
 0x3a2   :  { %v686_v1 = vadd.f32 %v684_v61, %v674_v63 }
 0x3a4   :  { %v689_v3 = vcombine.low %v685_v0, %v686_v1 }
 0x3a6   :  { %v696_v4 = vrot.slane %v689_v3, %v695_v2 }
 0x3a8   :  { %v703_v5 = vrot.slane %v696_v4, %v695_v2 }
 0x3aa   :  { %709 = vst.msk [vmem:[#allocation3] sm:$0x3] %vm707_vm1, %v703_v5 }
 0x3ab   :  { %861 = shalt.err (!%p858_p4)
}
 0x3ac   :  { %s862_s23 = scalar_lea.hbm %s1086_s7, 32 }
 0x3ad   :  { %p863_p5 = scmp.ne.s32.totalorder %s1086_s7, %s862_s23  ;;  %p866_p6 = scmp.lt.u32.totalorder %s862_s23, %s1086_s7 }
 0x3af   :  { %p868_p7 = pnand %p866_p6, %p863_p5 }
 0x3b1   :  { %871 = shalt.err (!%p868_p7)
}
 0x3b2   :  { %719 = dma.vmem_to_hbm [thread:$0]  %s717_s21, 32, %s1086_s7, [#allocation4]  }
 0x3b3   :  { %872 = dma.done.wait [#allocation4], 32  }
 0x3b4   :  { %873 = vsyncadd [#allocation4], 4294967264 }
 0x3b5   :  { %723 = vsyncpa [#allocation4], 1 }

// kernel: tpu_custom_call.1
= control target key start
LH: loop header
LB: loop body
LE: loop exit
PB: predicated region body
PF: predicated region fallthrough
CT: control target
= control target key end

     0   :  { %s1079_s0 = inlined_call_operand.vmem [shape: f32[1,256], index: 0, kind: input, shape index: {}]   ;;  %s1080_s1 = inlined_call_operand.vmem [shape: f32[32,1], index: 1, kind: input, shape index: {}]   ;;  %s1081_s2 = inlined_call_operand.vmem [shape: f32[32,1], index: 2, kind: input, shape index: {}]   ;;  %s1082_s3 = inlined_call_operand.vmem [shape: f32[3,32,32], index: 3, kind: input, shape index: {}]   ;;  %s1083_s4 = inlined_call_operand.vmem [shape: f32[3,32,1], index: 4, kind: input, shape index: {}]   ;;  %s1084_s5 = inlined_call_operand.vmem [shape: f32[32,1], index: 5, kind: input, shape index: {}]   ;;  %s1085_s6 = inlined_call_operand.<no memory space> [shape: f32[1,1], index: 6, kind: input, shape index: {}]   ;;  %s1086_s7 = inlined_call_operand.hbm [shape: f32[1,256], index: 7, kind: output, shape index: {}]  }
   0x1   :  { %v12_v0 = vstv %s1085_s6 }
   0x2   :  { %13 = vst [vmem:[#allocation2] sm:$0x1] %v12_v0 }
   0x3   :  { %v73_v1 = vld [vmem:[%s1081_s2] sm:$0xff]  ;;  %v874_v3 = vmov 0   ;;  %v74_v4 = vld [vmem:[%s1081_s2 + $0x8] sm:$0xff]  ;;  %v33_v6 = vld [vmem:[%s1080_s1 + $0x18] sm:$0xff] }
   0x4   :  { %v30_v2 = vld [vmem:[%s1080_s1] sm:$0xff]  ;;  %785 = vset.pattern.permute.xlu1 %v874_v3  ;;  %784 = vset.pattern.permute.xlu0 %v874_v3  ;;  %v31_v5 = vld [vmem:[%s1080_s1 + $0x8] sm:$0xff]  ;;  %v32_v7 = vld [vmem:[%s1080_s1 + $0x10] sm:$0xff] }
   0x5   :  { %79 = vperm.xlu1 %785, %v73_v1   ;;  %36 = vperm.xlu0 %784, %v30_v2  }
   0x9   :  { %84 = vperm.xlu1 %785, %v74_v4   ;;  %41 = vperm.xlu0 %784, %v31_v5  }
   0xa   :  { %14 = vsyncpa [#allocation4], 0  ;;  %v76_v8 = vld [vmem:[%s1081_s2 + $0x18] sm:$0xff]  ;;  %v75_v9 = vld [vmem:[%s1081_s2 + $0x10] sm:$0xff]  ;;  %v875_v24 = vmov 0.0   ;;  %v55_v28 = vlaneseq  ;;  %vm165_vm0 = vcmask 261120  }
   0xb   :  { %v142_v10 = vld [vmem:[%s1083_s4 + $0x8] sm:$0xff]  ;;  %v141_v11 = vld [vmem:[%s1083_s4] sm:$0xff]  ;;  %v144_v12 = vld [vmem:[%s1083_s4 + $0x18] sm:$0xff]  ;;  %242 = vmatprep.mubr.f32.mxu0 %v875_v24  ;;  %254 = vmatprep.mubr.f32.mxu1 %v875_v24 }
   0xc   :  { %v143_v13 = vld [vmem:[%s1083_s4 + $0x10] sm:$0xff]  ;;  %v733_v14 = vld [vmem:[%s1083_s4 + $0x28] sm:$0xff]  ;;  %v732_v15 = vld [vmem:[%s1083_s4 + $0x20] sm:$0xff]  ;;  %v996_v29 = vshrl.u32 %v55_v28, 7  ;;  %vm707_vm1 = vcmp.lt.s32.totalorder %v55_v28, 256 }
   0xd   :  { %51 = vperm.xlu1 %785, %v33_v6   ;;  %46 = vperm.xlu0 %784, %v32_v7   ;;  %v735_v16 = vld [vmem:[%s1083_s4 + $0x38] sm:$0xff]  ;;  %v734_v17 = vld [vmem:[%s1083_s4 + $0x30] sm:$0xff]  ;;  %v745_v18 = vld [vmem:[%s1083_s4 + $0x48] sm:$0xff] }
   0xe   :  { %v744_v19 = vld [vmem:[%s1083_s4 + $0x40] sm:$0xff]  ;;  %v747_v20 = vld [vmem:[%s1083_s4 + $0x58] sm:$0xff]  ;;  %v746_v21 = vld [vmem:[%s1083_s4 + $0x50] sm:$0xff]  ;;  %v57_v30 = vsub.s32 0, %v996_v29  ;;  %v61_v31 = vsub.s32 1, %v996_v29 }
   0xf   :  { %v626_v22 = vld [vmem:[%s1084_s5 + $0x8] sm:$0xff]  ;;  %v625_v23 = vld [vmem:[%s1084_s5] sm:$0xff]  ;;  %v628_v25 = vld [vmem:[%s1084_s5 + $0x18] sm:$0xff] }
  0x10   :  { %v627_v26 = vld [vmem:[%s1084_s5 + $0x10] sm:$0xff]  ;;  %v675_v27 = vld [vmem:[#allocation2] sm:$0x1] }
  0x11   :  { %94 = vperm.xlu1 %785, %v76_v8   ;;  %89 = vperm.xlu0 %784, %v75_v9   ;;  %v29_v32 = vld [vmem:[%s1079_s0] sm:$0x3] }
  0x12   :  { %v58_v33 = vrot.slane %v29_v32, %v57_v30  ;;  %v62_v34 = vrot.slane %v29_v32, %v61_v31 }
  0x15   :  { %152 = vperm.xlu1 %785, %v142_v10   ;;  %147 = vperm.xlu0 %784, %v141_v11  }
  0x19   :  { %162 = vperm.xlu1 %785, %v144_v12   ;;  %157 = vperm.xlu0 %784, %v143_v13  }
  0x1d   :  { %316 = vperm.xlu1 %785, %v733_v14   ;;  %311 = vperm.xlu0 %784, %v732_v15  }
  0x21   :  { %326 = vperm.xlu1 %785, %v735_v16   ;;  %321 = vperm.xlu0 %784, %v734_v17  }
  0x25   :  { %479 = vperm.xlu1 %785, %v745_v18   ;;  %474 = vperm.xlu0 %784, %v744_v19  }
  0x29   :  { %489 = vperm.xlu1 %785, %v747_v20   ;;  %484 = vperm.xlu0 %784, %v746_v21  }
  0x2d   :  { %636 = vperm.xlu1 %785, %v626_v22   ;;  %631 = vperm.xlu0 %784, %v625_v23  }
  0x31   :  { %646 = vperm.xlu1 %785, %v628_v25   ;;  %641 = vperm.xlu0 %784, %v627_v26  }
  0x35   :  { %678 = vperm.xlu0 %784, %v675_v27  }
  0x84   :  { %v80_v35 = vpop.permute.xlu1 %79  ;;  %v37_v36 = vpop.permute.xlu0 %36 }
  0x85   :  { %v65_v37 = vmul.f32 %v58_v33, %v37_v36  ;;  %v66_v38 = vmul.f32 %v62_v34, %v37_v36  ;;  %v139_v36 = vld [vmem:[%s1082_s3 + $0x10] sm:$0xff] }
  0x87   :  { %v97_v39 = vadd.f32 %v80_v35, %v65_v37  ;;  %v98_v40 = vadd.f32 %v80_v35, %v66_v38  ;;  %v137_v35 = vld [vmem:[%s1082_s3] sm:$0xff]  ;;  %v138_v37 = vld [vmem:[%s1082_s3 + $0x8] sm:$0xff]  ;;  %v140_v38 = vld [vmem:[%s1082_s3 + $0x18] sm:$0xff] }
  0x88   :  { %v85_v41 = vpop.permute.xlu1 %84  ;;  %v42_v42 = vpop.permute.xlu0 %41 }
  0x89   :  { %v105_v43 = vmul.f32 0.5, %v97_v39  ;;  %v106_v44 = vmul.f32 0.5, %v98_v40  ;;  %v67_v45 = vmul.f32 %v58_v33, %v42_v42  ;;  %v68_v46 = vmul.f32 %v62_v34, %v42_v42 }
  0x8b   :  { %786 = vtanh.f32 %v105_v43  ;;  %v99_v47 = vadd.f32 %v85_v41, %v67_v45  ;;  %v100_v48 = vadd.f32 %v85_v41, %v68_v46 }
  0x8c   :  { %788 = vtanh.f32 %v106_v44  ;;  %v52_v49 = vpop.permute.xlu1 %51  ;;  %v47_v50 = vpop.permute.xlu0 %46 }
  0x8d   :  { %v107_v51 = vmul.f32 0.5, %v99_v47  ;;  %v108_v52 = vmul.f32 0.5, %v100_v48  ;;  %v71_v53 = vmul.f32 %v58_v33, %v52_v49  ;;  %v72_v54 = vmul.f32 %v62_v34, %v52_v49 }
  0x8e   :  { %v69_v55 = vmul.f32 %v58_v33, %v47_v50  ;;  %v70_v56 = vmul.f32 %v62_v34, %v47_v50 }
  0x8f   :  { %790 = vtanh.f32 %v107_v51 }
  0x90   :  { %792 = vtanh.f32 %v108_v52  ;;  %v95_v57 = vpop.permute.xlu1 %94  ;;  %v90_v58 = vpop.permute.xlu0 %89 }
  0x91   :  { %v103_v59 = vadd.f32 %v95_v57, %v71_v53  ;;  %v104_v60 = vadd.f32 %v95_v57, %v72_v54  ;;  %v101_v61 = vadd.f32 %v90_v58, %v69_v55  ;;  %v102_v62 = vadd.f32 %v90_v58, %v70_v56 }
  0x93   :  { %v111_v63 = vmul.f32 0.5, %v103_v59  ;;  %v112_v0 = vmul.f32 0.5, %v104_v60  ;;  %v109_v1 = vmul.f32 0.5, %v101_v61  ;;  %v110_v2 = vmul.f32 0.5, %v102_v62 }
  0x94   :  { %v148_v39 = vpop.permute.xlu0 %147  ;;  %v153_v40 = vpop.permute.xlu1 %152 }
  0x95   :  { %v787_v3 = vpop.eup %786  ;;  %794 = vtanh.f32 %v111_v63 }
  0x96   :  { %v789_v4 = vpop.eup %788  ;;  %796 = vtanh.f32 %v112_v0  ;;  %v121_v5 = vmul.f32 0.5, %v787_v3 }
  0x97   :  { %798 = vtanh.f32 %v109_v1  ;;  %v122_v7 = vmul.f32 0.5, %v789_v4 }
  0x98   :  { %800 = vtanh.f32 %v110_v2  ;;  %v129_v11 = vadd.f32 0.5, %v121_v5  ;;  %v158_v41 = vpop.permute.xlu0 %157  ;;  %v163_v50 = vpop.permute.xlu1 %162 }
  0x99   :  { %v791_v6 = vpop.eup %790  ;;  %v130_v13 = vadd.f32 0.5, %v122_v7 }
  0x9a   :  { %v793_v8 = vpop.eup %792  ;;  %v123_v9 = vmul.f32 0.5, %v791_v6 }
  0x9b   :  { %v124_v10 = vmul.f32 0.5, %v793_v8 }
  0x9c   :  { %v131_v12 = vadd.f32 0.5, %v123_v9 }
  0x9d   :  { %v132_v14 = vadd.f32 0.5, %v124_v10 }
  0x9e   :  { %v754_v15 = vpack.c.bf16 %v131_v12, %v129_v11 }
  0x9f   :  { %v795_v16 = vpop.eup %794  ;;  %v752_v17 = vpack.c.bf16 %v132_v14, %v130_v13 }
  0xa0   :  { %v797_v18 = vpop.eup %796  ;;  %v127_v19 = vmul.f32 0.5, %v795_v16 }
  0xa1   :  { %v799_v20 = vpop.eup %798  ;;  %v128_v21 = vmul.f32 0.5, %v797_v18  ;;  %753 = vmatprep.subr.bf16.mxu0 %v752_v17  ;;  %776 = vmatprep.subr.bf16.mxu1 %v752_v17 }
  0xa2   :  { %v801_v22 = vpop.eup %800  ;;  %v125_v23 = vmul.f32 0.5, %v799_v20  ;;  %755 = vmatpush1.bf16.msra.mxu0 %v754_v15  ;;  %778 = vmatpush1.bf16.msra.mxu1 %v754_v15  ;;  %v135_v25 = vadd.f32 0.5, %v127_v19 }
  0xa3   :  { %v126_v26 = vmul.f32 0.5, %v801_v22  ;;  %v136_v27 = vadd.f32 0.5, %v128_v21 }
  0xa4   :  { %v133_v31 = vadd.f32 0.5, %v125_v23 }
  0xa5   :  { %v134_v32 = vadd.f32 0.5, %v126_v26 }
  0xa6   :  { %v758_v33 = vpack.c.bf16 %v135_v25, %v133_v31 }
  0xa7   :  { %v756_v34 = vpack.c.bf16 %v136_v27, %v134_v32 }
  0xa9   :  { %757 = vmatprep.subr.bf16.mxu0 %v756_v34  ;;  %777 = vmatprep.subr.bf16.mxu1 %v756_v34 }
  0xaa   :  { %759 = vmatpush1.bf16.msra.mxu0 %v758_v33  ;;  %779 = vmatpush1.bf16.msra.mxu1 %v758_v33 }
  0xad   :  { %724 = vmatmul.mubr.msk.f32.vlgmr.msra.gmra.mrb[0].mxu0 %vm165_vm0, %v137_v35  ;;  %726 = vmatmul.mubr.msk.f32.vlgmr.msra.gmra.mrb[0].mxu1 %vm165_vm0, %v139_v36  ;;  %v728_v35 = vld [vmem:[%s1082_s3 + $0x20] sm:$0xff]  ;;  %v729_v36 = vld [vmem:[%s1082_s3 + $0x28] sm:$0xff] }
  0xae   :  { %248 = vmatprep.mubr.f32.mxu0 %v875_v24  ;;  %260 = vmatprep.mubr.f32.mxu1 %v875_v24 }
  0xb1   :  { %725 = vmatmul.mubr.msk.f32.gmra.mrb[2].mxu0 %vm165_vm0, %v138_v37  ;;  %727 = vmatmul.mubr.msk.f32.gmra.mrb[2].mxu1 %vm165_vm0, %v140_v38  ;;  %v730_v37 = vld [vmem:[%s1082_s3 + $0x30] sm:$0xff]  ;;  %v731_v38 = vld [vmem:[%s1082_s3 + $0x38] sm:$0xff] }
  0xb2   :  { %405 = vmatprep.mubr.f32.mxu1 %v875_v24  ;;  %568 = vmatprep.mubr.f32.mxu0 %v875_v24 }
 0x180   :  { %v244_v42 = vpop.f32.mrb[0].mxu0  ;;  %v256_v43 = vpop.f32.mrb[0].mxu1 }
 0x181   :  { %v245_v44 = vadd.f32 %v244_v42, %v148_v39  ;;  %v257_v45 = vadd.f32 %v256_v43, %v158_v41  ;;  %v246_v46 = vpop.f32.mrb[1].mxu0  ;;  %v258_v47 = vpop.f32.mrb[1].mxu1 }
 0x182   :  { %v247_v48 = vadd.f32 %v246_v46, %v148_v39  ;;  %v259_v49 = vadd.f32 %v258_v47, %v158_v41  ;;  %v312_v39 = vpop.permute.xlu0 %311 }
 0x183   :  { %v267_v51 = vmul.f32 0.5, %v245_v44  ;;  %v271_v52 = vmul.f32 0.5, %v257_v45  ;;  %v317_v45 = vpop.permute.xlu1 %316 }
 0x184   :  { %v268_v53 = vmul.f32 0.5, %v247_v48  ;;  %v272_v54 = vmul.f32 0.5, %v259_v49  ;;  %v250_v55 = vpop.f32.mrb[2].mxu0  ;;  %v262_v56 = vpop.f32.mrb[2].mxu1 }
 0x185   :  { %802 = vtanh.f32 %v267_v51  ;;  %v251_v57 = vadd.f32 %v250_v55, %v153_v40  ;;  %v263_v58 = vadd.f32 %v262_v56, %v163_v50  ;;  %v252_v59 = vpop.f32.mrb[3].mxu0  ;;  %v264_v60 = vpop.f32.mrb[3].mxu1 }
 0x186   :  { %804 = vtanh.f32 %v271_v52  ;;  %v253_v61 = vadd.f32 %v252_v59, %v153_v40  ;;  %v265_v62 = vadd.f32 %v264_v60, %v163_v50  ;;  %v322_v52 = vpop.permute.xlu0 %321 }
 0x187   :  { %806 = vtanh.f32 %v268_v53  ;;  %v269_v63 = vmul.f32 0.5, %v251_v57  ;;  %v273_v0 = vmul.f32 0.5, %v263_v58  ;;  %v327_v59 = vpop.permute.xlu1 %326 }
 0x188   :  { %808 = vtanh.f32 %v272_v54  ;;  %v270_v1 = vmul.f32 0.5, %v253_v61  ;;  %v274_v2 = vmul.f32 0.5, %v265_v62 }
 0x189   :  { %810 = vtanh.f32 %v269_v63 }
 0x18a   :  { %812 = vtanh.f32 %v273_v0 }
 0x18b   :  { %814 = vtanh.f32 %v270_v1 }
 0x18c   :  { %816 = vtanh.f32 %v274_v2 }
 0x18f   :  { %v803_v3 = vpop.eup %802 }
 0x190   :  { %v805_v4 = vpop.eup %804  ;;  %v283_v7 = vmul.f32 0.5, %v803_v3 }
 0x191   :  { %v807_v5 = vpop.eup %806  ;;  %v287_v9 = vmul.f32 0.5, %v805_v4 }
 0x192   :  { %v809_v6 = vpop.eup %808  ;;  %v284_v11 = vmul.f32 0.5, %v807_v5  ;;  %v291_v17 = vadd.f32 0.5, %v283_v7 }
 0x193   :  { %v811_v8 = vpop.eup %810  ;;  %v288_v14 = vmul.f32 0.5, %v809_v6  ;;  %v295_v20 = vadd.f32 0.5, %v287_v9 }
 0x194   :  { %v813_v10 = vpop.eup %812  ;;  %v285_v12 = vmul.f32 0.5, %v811_v8  ;;  %v292_v23 = vadd.f32 0.5, %v284_v11 }
 0x195   :  { %v815_v13 = vpop.eup %814  ;;  %v289_v15 = vmul.f32 0.5, %v813_v10  ;;  %v296_v27 = vadd.f32 0.5, %v288_v14 }
 0x196   :  { %v817_v16 = vpop.eup %816  ;;  %v293_v18 = vadd.f32 0.5, %v285_v12  ;;  %v286_v19 = vmul.f32 0.5, %v815_v13 }
 0x197   :  { %v297_v21 = vadd.f32 0.5, %v289_v15  ;;  %v290_v22 = vmul.f32 0.5, %v817_v16 }
 0x198   :  { %v762_v25 = vpack.c.bf16 %v293_v18, %v291_v17  ;;  %v294_v26 = vadd.f32 0.5, %v286_v19 }
 0x199   :  { %v766_v31 = vpack.c.bf16 %v297_v21, %v295_v20  ;;  %v298_v32 = vadd.f32 0.5, %v290_v22 }
 0x19a   :  { %v760_v33 = vpack.c.bf16 %v294_v26, %v292_v23 }
 0x19b   :  { %v764_v34 = vpack.c.bf16 %v298_v32, %v296_v27 }
 0x19c   :  { %761 = vmatprep.subr.bf16.mxu1 %v760_v33 }
 0x19d   :  { %763 = vmatpush1.bf16.msra.mxu1 %v762_v25 }
 0x19e   :  { %765 = vmatprep.subr.bf16.mxu1 %v764_v34 }
 0x1a1   :  { %767 = vmatpush1.bf16.msra.mxu1 %v766_v31 }
 0x1a4   :  { %736 = vmatmul.mubr.msk.f32.vlgmr.msra.gmra.mrb[4].mxu1 %vm165_vm0, %v728_v35  ;;  %v740_v35 = vld [vmem:[%s1082_s3 + $0x40] sm:$0xff] }
 0x1a5   :  { %411 = vmatprep.mubr.f32.mxu1 %v875_v24 }
 0x1a8   :  { %737 = vmatmul.mubr.msk.f32.gmra.mrb[6].mxu1 %vm165_vm0, %v729_v36  ;;  %v741_v36 = vld [vmem:[%s1082_s3 + $0x48] sm:$0xff] }
 0x1a9   :  { %417 = vmatprep.mubr.f32.mxu1 %v875_v24 }
 0x1ac   :  { %738 = vmatmul.mubr.msk.f32.gmra.mrb[8].mxu1 %vm165_vm0, %v730_v37  ;;  %v742_v37 = vld [vmem:[%s1082_s3 + $0x50] sm:$0xff] }
 0x1ad   :  { %423 = vmatprep.mubr.f32.mxu1 %v875_v24 }
 0x1b0   :  { %739 = vmatmul.mubr.msk.f32.gmra.mrb[10].mxu1 %vm165_vm0, %v731_v38  ;;  %v743_v38 = vld [vmem:[%s1082_s3 + $0x58] sm:$0xff]  ;;  %s877_s3 = smov [#allocation3]  }
 0x1b1   :  { %s716_s21 = sshll.u32 %s877_s3, 4  ;;  %s717_s21 = int_to_ptr.vmem [resolvable:$true] %s716_s21 }
 0x1b2   :  { %s850_s4 = scalar_lea.vmem %s717_s21, 32  ;;  %p855_p1 = scmp.lt.s32.totalorder %s717_s21, %s717_s21 }
 0x1b3   :  { %p851_p0 = scmp.ne.s32.totalorder %s717_s21, %s850_s4  ;;  %p856_p2 = scmp.lt.s32.totalorder %s850_s4, %s850_s4 }
 0x1b5   :  { %p857_p3 = por %p856_p2, %p855_p1 }
 0x1b7   :  { %p858_p4 = pnand %p857_p3, %p851_p0 }
 0x277   :  { %v407_v40 = vpop.f32.mrb[4].mxu1 }
 0x278   :  { %v408_v41 = vadd.f32 %v407_v40, %v312_v39  ;;  %v409_v42 = vpop.f32.mrb[5].mxu1 }
 0x279   :  { %v410_v43 = vadd.f32 %v409_v42, %v312_v39  ;;  %v475_v39 = vpop.permute.xlu0 %474 }
 0x27a   :  { %v430_v44 = vmul.f32 0.5, %v408_v41 }
 0x27b   :  { %v431_v46 = vmul.f32 0.5, %v410_v43  ;;  %v413_v47 = vpop.f32.mrb[6].mxu1 }
 0x27c   :  { %818 = vtanh.f32 %v430_v44  ;;  %v414_v48 = vadd.f32 %v413_v47, %v317_v45  ;;  %v415_v49 = vpop.f32.mrb[7].mxu1 }
 0x27d   :  { %820 = vtanh.f32 %v431_v46  ;;  %v416_v50 = vadd.f32 %v415_v49, %v317_v45  ;;  %v480_v45 = vpop.permute.xlu1 %479 }
 0x27e   :  { %v432_v51 = vmul.f32 0.5, %v414_v48 }
 0x27f   :  { %v433_v53 = vmul.f32 0.5, %v416_v50  ;;  %v419_v54 = vpop.f32.mrb[8].mxu1 }
 0x280   :  { %822 = vtanh.f32 %v432_v51  ;;  %v420_v55 = vadd.f32 %v419_v54, %v322_v52  ;;  %v421_v56 = vpop.f32.mrb[9].mxu1  ;;  %v485_v51 = vpop.permute.xlu0 %484 }
 0x281   :  { %824 = vtanh.f32 %v433_v53  ;;  %v422_v57 = vadd.f32 %v421_v56, %v322_v52 }
 0x282   :  { %v434_v58 = vmul.f32 0.5, %v420_v55 }
 0x283   :  { %v435_v60 = vmul.f32 0.5, %v422_v57  ;;  %v425_v61 = vpop.f32.mrb[10].mxu1 }
 0x284   :  { %826 = vtanh.f32 %v434_v58  ;;  %v426_v62 = vadd.f32 %v425_v61, %v327_v59  ;;  %v427_v63 = vpop.f32.mrb[11].mxu1  ;;  %v490_v58 = vpop.permute.xlu1 %489 }
 0x285   :  { %828 = vtanh.f32 %v435_v60  ;;  %v428_v0 = vadd.f32 %v427_v63, %v327_v59 }
 0x286   :  { %v819_v1 = vpop.eup %818  ;;  %v436_v2 = vmul.f32 0.5, %v426_v62 }
 0x287   :  { %v821_v3 = vpop.eup %820  ;;  %v437_v4 = vmul.f32 0.5, %v428_v0  ;;  %v446_v5 = vmul.f32 0.5, %v819_v1 }
 0x288   :  { %830 = vtanh.f32 %v436_v2  ;;  %v447_v7 = vmul.f32 0.5, %v821_v3 }
 0x289   :  { %832 = vtanh.f32 %v437_v4  ;;  %v454_v11 = vadd.f32 0.5, %v446_v5 }
 0x28a   :  { %v823_v6 = vpop.eup %822  ;;  %v455_v14 = vadd.f32 0.5, %v447_v7 }
 0x28b   :  { %v825_v8 = vpop.eup %824  ;;  %v448_v9 = vmul.f32 0.5, %v823_v6 }
 0x28c   :  { %v449_v10 = vmul.f32 0.5, %v825_v8 }
 0x28d   :  { %v456_v12 = vadd.f32 0.5, %v448_v9 }
 0x28e   :  { %v827_v13 = vpop.eup %826  ;;  %v457_v15 = vadd.f32 0.5, %v449_v10  ;;  %v632_v10 = vpop.permute.xlu0 %631 }
 0x28f   :  { %v829_v16 = vpop.eup %828  ;;  %v770_v17 = vpack.c.bf16 %v456_v12, %v454_v11  ;;  %v450_v19 = vmul.f32 0.5, %v827_v13 }
 0x290   :  { %v768_v18 = vpack.c.bf16 %v457_v15, %v455_v14  ;;  %v451_v21 = vmul.f32 0.5, %v829_v16  ;;  %v637_v15 = vpop.permute.xlu1 %636 }
 0x291   :  { %v458_v26 = vadd.f32 0.5, %v450_v19 }
 0x292   :  { %v831_v20 = vpop.eup %830  ;;  %769 = vmatprep.subr.bf16.mxu0 %v768_v18  ;;  %v459_v31 = vadd.f32 0.5, %v451_v21 }
 0x293   :  { %v833_v22 = vpop.eup %832  ;;  %v452_v23 = vmul.f32 0.5, %v831_v20  ;;  %771 = vmatpush1.bf16.msra.mxu0 %v770_v17 }
 0x294   :  { %v453_v25 = vmul.f32 0.5, %v833_v22 }
 0x295   :  { %v460_v27 = vadd.f32 0.5, %v452_v23 }
 0x296   :  { %v461_v32 = vadd.f32 0.5, %v453_v25 }
 0x297   :  { %v774_v33 = vpack.c.bf16 %v460_v27, %v458_v26 }
 0x298   :  { %v772_v34 = vpack.c.bf16 %v461_v32, %v459_v31  ;;  %v642_v31 = vpop.permute.xlu0 %641 }
 0x29a   :  { %773 = vmatprep.subr.bf16.mxu0 %v772_v34 }
 0x29b   :  { %775 = vmatpush1.bf16.msra.mxu0 %v774_v33 }
 0x29e   :  { %748 = vmatmul.mubr.msk.f32.vlgmr.msra.gmra.mrb[4].mxu0 %vm165_vm0, %v740_v35 }
 0x29f   :  { %574 = vmatprep.mubr.f32.mxu0 %v875_v24 }
 0x2a2   :  { %749 = vmatmul.mubr.msk.f32.gmra.mrb[6].mxu0 %vm165_vm0, %v741_v36 }
 0x2a3   :  { %580 = vmatprep.mubr.f32.mxu0 %v875_v24 }
 0x2a6   :  { %750 = vmatmul.mubr.msk.f32.gmra.mrb[8].mxu0 %vm165_vm0, %v742_v37 }
 0x2a7   :  { %586 = vmatprep.mubr.f32.mxu0 %v875_v24 }
 0x2aa   :  { %751 = vmatmul.mubr.msk.f32.gmra.mrb[10].mxu0 %vm165_vm0, %v743_v38 }
 0x371   :  { %v570_v40 = vpop.f32.mrb[4].mxu0 }
 0x372   :  { %v571_v41 = vadd.f32 %v570_v40, %v475_v39  ;;  %v572_v42 = vpop.f32.mrb[5].mxu0 }
 0x373   :  { %v573_v43 = vadd.f32 %v572_v42, %v475_v39 }
 0x374   :  { %v593_v44 = vmul.f32 0.5, %v571_v41  ;;  %v647_v41 = vpop.permute.xlu1 %646 }
 0x375   :  { %v594_v46 = vmul.f32 0.5, %v573_v43  ;;  %v576_v47 = vpop.f32.mrb[6].mxu0 }
 0x376   :  { %834 = vtanh.f32 %v593_v44  ;;  %v577_v48 = vadd.f32 %v576_v47, %v480_v45  ;;  %v578_v49 = vpop.f32.mrb[7].mxu0 }
 0x377   :  { %836 = vtanh.f32 %v594_v46  ;;  %v579_v24 = vadd.f32 %v578_v49, %v480_v45 }
 0x378   :  { %v595_v50 = vmul.f32 0.5, %v577_v48 }
 0x379   :  { %v596_v52 = vmul.f32 0.5, %v579_v24  ;;  %v582_v53 = vpop.f32.mrb[8].mxu0 }
 0x37a   :  { %838 = vtanh.f32 %v595_v50  ;;  %v583_v54 = vadd.f32 %v582_v53, %v485_v51  ;;  %v584_v55 = vpop.f32.mrb[9].mxu0  ;;  %v876_v53 = vmov 1966171168  }
 0x37b   :  { %840 = vtanh.f32 %v596_v52  ;;  %v585_v56 = vadd.f32 %v584_v55, %v485_v51 }
 0x37c   :  { %v597_v57 = vmul.f32 0.5, %v583_v54  ;;  %v691_v54 = vunpack.c.l.s4 %v876_v53 }
 0x37d   :  { %v598_v59 = vmul.f32 0.5, %v585_v56  ;;  %v588_v60 = vpop.f32.mrb[10].mxu0  ;;  %v679_v56 = vpop.permute.xlu0 %678 }
 0x37e   :  { %842 = vtanh.f32 %v597_v57  ;;  %v589_v61 = vadd.f32 %v588_v60, %v490_v58  ;;  %v590_v62 = vpop.f32.mrb[11].mxu0  ;;  %v692_v60 = vunpack.c.0.s8 %v691_v54 }
 0x37f   :  { %844 = vtanh.f32 %v598_v59  ;;  %v591_v63 = vadd.f32 %v590_v62, %v490_v58 }
 0x380   :  { %v835_v0 = vpop.eup %834  ;;  %v599_v1 = vmul.f32 0.5, %v589_v61  ;;  %v684_v61 = vrot.slane %v679_v56, %v57_v30 }
 0x381   :  { %v837_v2 = vpop.eup %836  ;;  %v609_v3 = vmul.f32 0.5, %v835_v0  ;;  %v600_v4 = vmul.f32 0.5, %v591_v63 }
 0x382   :  { %v610_v5 = vmul.f32 0.5, %v837_v2  ;;  %846 = vtanh.f32 %v599_v1  ;;  %v695_v2 = vsub.s32 %v692_v60, %v996_v29 }
 0x383   :  { %848 = vtanh.f32 %v600_v4  ;;  %v617_v8 = vadd.f32 0.5, %v609_v3 }
 0x384   :  { %v839_v6 = vpop.eup %838  ;;  %v618_v11 = vadd.f32 0.5, %v610_v5 }
 0x385   :  { %v841_v7 = vpop.eup %840  ;;  %v611_v9 = vmul.f32 0.5, %v839_v6  ;;  %v649_v18 = vmul.f32 %v632_v10, %v617_v8 }
 0x386   :  { %v612_v12 = vmul.f32 0.5, %v841_v7  ;;  %v650_v21 = vmul.f32 %v632_v10, %v618_v11 }
 0x387   :  { %v619_v13 = vadd.f32 0.5, %v611_v9 }
 0x388   :  { %v843_v14 = vpop.eup %842  ;;  %v620_v16 = vadd.f32 0.5, %v612_v12 }
 0x389   :  { %v845_v17 = vpop.eup %844  ;;  %v651_v19 = vmul.f32 %v637_v15, %v619_v13  ;;  %v613_v20 = vmul.f32 0.5, %v843_v14 }
 0x38a   :  { %v652_v22 = vmul.f32 %v637_v15, %v620_v16  ;;  %v614_v23 = vmul.f32 0.5, %v845_v17 }
 0x38b   :  { %v657_v25 = vadd.f32 %v651_v19, %v649_v18  ;;  %v621_v26 = vadd.f32 0.5, %v613_v20 }
 0x38c   :  { %v847_v27 = vpop.eup %846  ;;  %v666_v32 = vadd.f32 %v652_v22, %v650_v21  ;;  %v622_v33 = vadd.f32 0.5, %v614_v23 }
 0x38d   :  { %v849_v34 = vpop.eup %848  ;;  %v653_v35 = vmul.f32 %v642_v31, %v621_v26  ;;  %v615_v36 = vmul.f32 0.5, %v847_v27 }
 0x38e   :  { %v654_v37 = vmul.f32 %v642_v31, %v622_v33  ;;  %v616_v38 = vmul.f32 0.5, %v849_v34 }
 0x38f   :  { %v658_v39 = vadd.f32 %v657_v25, %v653_v35  ;;  %v623_v40 = vadd.f32 0.5, %v615_v36 }
 0x390   :  { %v667_v42 = vadd.f32 %v666_v32, %v654_v37  ;;  %v624_v43 = vadd.f32 0.5, %v616_v38 }
 0x391   :  { %v655_v44 = vmul.f32 %v647_v41, %v623_v40 }
 0x392   :  { %v656_v45 = vmul.f32 %v647_v41, %v624_v43 }
 0x393   :  { %v659_v46 = vadd.f32 %v658_v39, %v655_v44 }
 0x394   :  { %v668_v47 = vadd.f32 %v667_v42, %v656_v45 }
 0x395   :  { %v660_v48 = vrot.slane %v659_v46, 4 }
 0x396   :  { %v669_v49 = vrot.slane %v668_v47, 4 }
 0x397   :  { %v661_v24 = vadd.f32 %v660_v48, %v659_v46 }
 0x398   :  { %v670_v50 = vadd.f32 %v669_v49, %v668_v47 }
 0x399   :  { %v662_v51 = vrot.slane %v661_v24, 2 }
 0x39a   :  { %v671_v52 = vrot.slane %v670_v50, 2 }
 0x39b   :  { %v663_v55 = vadd.f32 %v662_v51, %v661_v24 }
 0x39c   :  { %v672_v57 = vadd.f32 %v671_v52, %v670_v50 }
 0x39d   :  { %v664_v58 = vrot.slane %v663_v55, 1 }
 0x39e   :  { %v673_v59 = vrot.slane %v672_v57, 1 }
 0x39f   :  { %v665_v62 = vadd.f32 %v664_v58, %v663_v55 }
 0x3a0   :  { %v674_v63 = vadd.f32 %v673_v59, %v672_v57 }
 0x3a1   :  { %v685_v0 = vadd.f32 %v684_v61, %v665_v62 }
 0x3a2   :  { %v686_v1 = vadd.f32 %v684_v61, %v674_v63 }
 0x3a4   :  { %v689_v3 = vcombine.low %v685_v0, %v686_v1 }
 0x3a6   :  { %v696_v4 = vrot.slane %v689_v3, %v695_v2 }
 0x3a8   :  { %v703_v5 = vrot.slane %v696_v4, %v695_v2 }
 0x3aa   :  { %709 = vst.msk [vmem:[#allocation3] sm:$0x3] %vm707_vm1, %v703_v5 }
 0x3ab   :  { %861 = shalt.err (!%p858_p4)
}
 0x3ac   :  { %s862_s23 = scalar_lea.hbm %s1086_s7, 32 }
 0x3ad   :  { %p863_p5 = scmp.ne.s32.totalorder %s1086_s7, %s862_s23  ;;  %p866_p6 = scmp.lt.u32.totalorder %s862_s23, %s1086_s7 }
 0x3af   :  { %p868_p7 = pnand %p866_p6, %p863_p5 }
 0x3b1   :  { %871 = shalt.err (!%p868_p7)
}
 0x3b2   :  { %719 = dma.vmem_to_hbm [thread:$0]  %s717_s21, 32, %s1086_s7, [#allocation4]  }
 0x3b3   :  { %872 = dma.done.wait [#allocation4], 32  }
 0x3b4   :  { %873 = vsyncadd [#allocation4], 4294967264 }
 0x3b5   :  { %723 = vsyncpa [#allocation4], 1 }

</bundles_post_ra>
